<compile_context>
chip_gen: v7x
topology: tpu7x:2x2x1
jax: 0.10.0
libtpu: 0.0.40
codegen_flags: <defaults>
</compile_context>

<pallas_src>
import jax
import jax.numpy as jnp
from jax.experimental import pallas as pl
from jax.experimental.pallas import tpu as pltpu


# ------------------------------ Pallas kernel ------------------------------ #

def _make_inception_kernel(W, C0, c2_0, c3_0, ctot, compute_dtype):
    """Builds the fused Inception kernel for static spatial/channel sizes."""

    def kernel(x_ref, w2a_ref, b2a_ref, w3a_ref, b3a_ref,
               k1_ref, k4_ref, w2b_ref, w3b_ref, bout_ref, o_ref):
        # x_ref   : (B_blk, H, W*C0)            bf16 input rows, channels minor
        # w2a/w3a : (W*C0, W*c2_0 | W*c3_0)     kron-packed 1x1 head weights
        # b2a/b3a : (1, W*c2_0 | W*c3_0)        W-tiled head biases (f32)
        # k1/k4   : (W*C0, W*ctot)              kron-packed 1x1 weights placed
        #                                       at their final output lanes
        # w2b/w3b : (3|5, W*c2_0|c3_0, W*ctot)  banded 3x3/5x5 weights (per dy)
        # bout    : (1, W*ctot)                 concatenated, W-tiled bias
        # o_ref   : (B_blk, H, W*ctot)          lane-dense fused output
        B, H, _ = x_ref.shape
        M = B * H
        f32 = jnp.float32

        x = x_ref[...]                               # (B, H, W*C0)
        x2d = x.reshape(M, W * C0)

        # ---- branch 1: 1x1 conv -> output lanes [0, c1) of every pixel ----
        acc = jnp.dot(x2d, k1_ref[...], preferred_element_type=f32)

        # ---- branch 4: 3x3 stride-1 max-pool (-inf halo, PyTorch) + 1x1 ----
        ninf = jnp.asarray(-jnp.inf, compute_dtype)
        ninf_col = jnp.full((B, H, C0), ninf, compute_dtype)
        xw = jnp.concatenate([ninf_col, x, ninf_col], axis=2)   # (B,H,(W+2)C0)
        ninf_row = jnp.full((B, 1, (W + 2) * C0), ninf, compute_dtype)
        xp = jnp.concatenate([ninf_row, xw, ninf_row], axis=1)  # (B,H+2,(W+2)C0)
        pooled = xp[:, 1:1 + H, C0:C0 + W * C0]
        for dy in range(3):
            for dx in range(3):
                if (dy, dx) != (1, 1):
                    pooled = jnp.maximum(
                        pooled, xp[:, dy:dy + H, dx * C0:dx * C0 + W * C0])
        acc = acc + jnp.dot(pooled.reshape(M, W * C0), k4_ref[...],
                            preferred_element_type=f32)

        # ---- branch 2: 1x1 head (bias+ReLU), 3x3 conv = 3 banded matmuls ---
        y2 = jnp.maximum(
            jnp.dot(x2d, w2a_ref[...], preferred_element_type=f32)
            + b2a_ref[...], 0.0).astype(compute_dtype)           # (M, W*c2_0)
        z2 = jnp.zeros((B, 1, W * c2_0), compute_dtype)
        y2p = jnp.concatenate([z2, y2.reshape(B, H, W * c2_0), z2], axis=1)
        for dy in range(3):
            acc = acc + jnp.dot(y2p[:, dy:dy + H, :].reshape(M, W * c2_0),
                                w2b_ref[dy], preferred_element_type=f32)

        # ---- branch 3: 1x1 head (bias+ReLU), 5x5 conv = 5 banded matmuls ---
        y3 = jnp.maximum(
            jnp.dot(x2d, w3a_ref[...], preferred_element_type=f32)
            + b3a_ref[...], 0.0).astype(compute_dtype)           # (M, W*c3_0)
        z3 = jnp.zeros((B, 2, W * c3_0), compute_dtype)
        y3p = jnp.concatenate([z3, y3.reshape(B, H, W * c3_0), z3], axis=1)
        for dy in range(5):
            acc = acc + jnp.dot(y3p[:, dy:dy + H, :].reshape(M, W * c3_0),
                                w3b_ref[dy], preferred_element_type=f32)

        # ---- single bias add + ReLU (branches live in disjoint lanes) and
        #      one lane-dense store of the already-concatenated result -------
        out = jnp.maximum(acc + bout_ref[...], 0.0)
        o_ref[...] = out.reshape(B, H, W * ctot).astype(o_ref.dtype)

    return kernel


# --------------------------- weight pre-packing ----------------------------- #

def _place_cols(w, off, ctot):
    """Embed (cin, cout) into (cin, ctot) at column offset `off`."""
    cin, cout = w.shape
    return jnp.zeros((cin, ctot), w.dtype).at[:, off:off + cout].set(w)


def _kron_1x1(w, W):
    """1x1 conv (cin, cout) -> (W*cin, W*cout) block-diagonal row-matmul."""
    return jnp.kron(jnp.eye(W, dtype=w.dtype), w)


def _banded_conv(wk, W, off, ctot):
    """KxK HWIO conv (SAME, stride 1) -> (K, W*cin, W*ctot) banded weights.

    Band `dy` multiplies image row (h + dy - K//2); zero padding along W is
    folded into the band structure; the output block lands at lane offset
    `off` of every output pixel."""
    K, _, cin, cout = wk.shape
    pad = K // 2
    bands = []
    for dy in range(K):
        m = jnp.zeros((W * cin, W * ctot), wk.dtype)
        for dx in range(K):
            sel = jnp.eye(W, W, k=pad - dx, dtype=wk.dtype)   # out_w = in_w+pad-dx
            m = m + jnp.kron(sel, _place_cols(wk[dy, dx], off, ctot))
        bands.append(m)
    return jnp.stack(bands)


def _pick_batch_block(n, h):
    """Images per grid step: keep per-step rows moderate, but give the DMA
    pipeline (and v7x's two TensorCores) >= ~4 grid steps when N allows."""
    cap = max(1, min(n, 512 // max(h, 1), n // 4 if n >= 4 else 1))
    for b in range(cap, 0, -1):
        if n % b == 0:
            return b
    return 1


# --------------------------------- wrapper --------------------------------- #

@jax.jit
def inception_forward(params, x_nchw):
    compute_dtype = jnp.bfloat16      # MXU-native on v6e/v7x; f32 accumulation
    N, C0, H, W = x_nchw.shape

    c1 = params["p1_w"].shape[1]
    c2_0, c2_1 = params["p2b_w"].shape[2], params["p2b_w"].shape[3]
    c3_0, c3_1 = params["p3b_w"].shape[2], params["p3b_w"].shape[3]
    c4 = params["p4_w"].shape[1]
    ctot = c1 + c2_1 + c3_1 + c4

    # Lane-dense row layout: (N, H, W*C0), channels minor along lanes.
    x_rows = (jnp.transpose(x_nchw, (0, 2, 3, 1))
              .reshape(N, H, W * C0).astype(compute_dtype))

    # Pack weights once (tiny): place every branch at its output-channel lanes.
    off2 = c1
    off3 = c1 + c2_1
    off4 = c1 + c2_1 + c3_1
    w2a = _kron_1x1(params["p2a_w"], W).astype(compute_dtype)
    w3a = _kron_1x1(params["p3a_w"], W).astype(compute_dtype)
    b2a = jnp.tile(params["p2a_b"], W)[None].astype(jnp.float32)
    b3a = jnp.tile(params["p3a_b"], W)[None].astype(jnp.float32)
    k1 = _kron_1x1(_place_cols(params["p1_w"], 0, ctot), W).astype(compute_dtype)
    k4 = _kron_1x1(_place_cols(params["p4_w"], off4, ctot), W).astype(compute_dtype)
    w2b = _banded_conv(params["p2b_w"], W, off2, ctot).astype(compute_dtype)
    w3b = _banded_conv(params["p3b_w"], W, off3, ctot).astype(compute_dtype)
    bout = jnp.tile(jnp.concatenate([params["p1_b"], params["p2b_b"],
                                     params["p3b_b"], params["p4_b"]]),
                    W)[None].astype(jnp.float32)

    b_blk = _pick_batch_block(N, H)
    vmem_spec = pl.BlockSpec(memory_space=pltpu.MemorySpace.VMEM)  # whole array,
    # resident in VMEM, not double-buffered per grid step.

    kernel = _make_inception_kernel(W, C0, c2_0, c3_0, ctot, compute_dtype)
    out_rows = pl.pallas_call(
        kernel,
        out_shape=jax.ShapeDtypeStruct((N, H, W * ctot), jnp.float32),
        grid=(N // b_blk,),
        in_specs=[
            pl.BlockSpec((b_blk, H, W * C0), lambda i: (i, 0, 0)),
            vmem_spec, vmem_spec, vmem_spec, vmem_spec,     # w2a b2a w3a b3a
            vmem_spec, vmem_spec,                           # k1 k4
            vmem_spec, vmem_spec, vmem_spec,                # w2b w3b bout
        ],
        out_specs=pl.BlockSpec((b_blk, H, W * ctot), lambda i: (i, 0, 0)),
        compiler_params=pltpu.CompilerParams(
            dimension_semantics=("parallel",),
            vmem_limit_bytes=32 * 1024 * 1024),
    )(x_rows, w2a, b2a, w3a, b3a, k1, k4, w2b, w3b, bout)

    # (N, H, W*ctot) lane-dense slab -> NCHW for PyTorch layout parity.
    return jnp.transpose(out_rows.reshape(N, H, W, ctot), (0, 3, 1, 2))


# ------------------------------- parameters -------------------------------- #

def init_inception_params(key, c0, c1, c2, c3, c4):
    """Deterministic synthetic parameters (same shapes as the PyTorch module)."""
    ks = jax.random.split(key, 12)

    def w(k, shape):
        return jax.random.normal(k, shape, jnp.float32) * 0.1

    return {
        "p1_w": w(ks[0], (c0, c1)),              "p1_b": w(ks[1], (c1,)),
        "p2a_w": w(ks[2], (c0, c2[0])),          "p2a_b": w(ks[3], (c2[0],)),
        "p2b_w": w(ks[4], (3, 3, c2[0], c2[1])), "p2b_b": w(ks[5], (c2[1],)),
        "p3a_w": w(ks[6], (c0, c3[0])),          "p3a_b": w(ks[7], (c3[0],)),
        "p3b_w": w(ks[8], (5, 5, c3[0], c3[1])), "p3b_b": w(ks[9], (c3[1],)),
        "p4_w": w(ks[10], (c0, c4)),             "p4_b": w(ks[11], (c4,)),
    }


# ------------------------- pure-JAX reference check ------------------------ #

def _conv_relu_ref(x_nhwc, w_hwio, b):
    y = jax.lax.conv_general_dilated(
        x_nhwc, w_hwio, (1, 1), "SAME",
        dimension_numbers=("NHWC", "HWIO", "NHWC"))
    return jax.nn.relu(y + b.reshape(1, 1, 1, -1))


def inception_reference(params, x_nchw):
    x = jnp.transpose(x_nchw, (0, 2, 3, 1)).astype(jnp.float32)
    x1 = _conv_relu_ref(x, params["p1_w"][None, None], params["p1_b"])
    x2 = _conv_relu_ref(
        _conv_relu_ref(x, params["p2a_w"][None, None], params["p2a_b"]),
        params["p2b_w"], params["p2b_b"])
    x3 = _conv_relu_ref(
        _conv_relu_ref(x, params["p3a_w"][None, None], params["p3a_b"]),
        params["p3b_w"], params["p3b_b"])
    pooled = jax.lax.reduce_window(x, -jnp.inf, jax.lax.max,
                                   (1, 3, 3, 1), (1, 1, 1, 1), "SAME")
    x4 = _conv_relu_ref(pooled, params["p4_w"][None, None], params["p4_b"])
    out = jnp.concatenate([x1, x2, x3, x4], axis=-1)
    return jnp.transpose(out, (0, 3, 1, 2))


# ----------------------------------- main ----------------------------------- #

if __name__ == "__main__":
    key = jax.random.PRNGKey(0)
    k_x, k_p = jax.random.split(key)

    # Inception(c0=4, c1=8, c2=(4,8), c3=(4,8), c4=8): out channels = 32
    c0, c1, c2, c3, c4 = 4, 8, (4, 8), (4, 8), 8
    x = jax.random.normal(k_x, (2, c0, 16, 16), jnp.float32)   # NCHW like torch
    params = init_inception_params(k_p, c0, c1, c2, c3, c4)

    out = jax.block_until_ready(inception_forward(params, x))
    assert out.shape == (2, c1 + c2[1] + c3[1] + c4, 16, 16), out.shape

    ref = jax.block_until_ready(inception_reference(params, x))
    max_err = float(jnp.max(jnp.abs(out - ref)))
    # bf16 MXU inputs with f32 accumulation vs f32 reference -> relaxed tol.
    assert jnp.allclose(out, ref, rtol=5e-2, atol=5e-2), max_err

    print("KERNEL_OK")
</pallas_src>

<mosaic_0001>
module attributes {stable_mosaic.version = 11 : i64} {
  func.func @kernel(%arg0: i32, %arg1: memref<1x16x64xbf16, #tpu.memory_space<vmem>>, %arg2: memref<64x64xbf16, #tpu.memory_space<vmem>>, %arg3: memref<1x64xf32, #tpu.memory_space<vmem>>, %arg4: memref<64x64xbf16, #tpu.memory_space<vmem>>, %arg5: memref<1x64xf32, #tpu.memory_space<vmem>>, %arg6: memref<64x512xbf16, #tpu.memory_space<vmem>>, %arg7: memref<64x512xbf16, #tpu.memory_space<vmem>>, %arg8: memref<3x64x512xbf16, #tpu.memory_space<vmem>>, %arg9: memref<5x64x512xbf16, #tpu.memory_space<vmem>>, %arg10: memref<1x512xf32, #tpu.memory_space<vmem>>, %arg11: memref<1x16x512xf32, #tpu.memory_space<vmem>>) attributes {dimension_semantics = [#tpu.dimension_semantics<parallel>], iteration_bounds = array<i64: 2>, scalar_prefetch = 0 : i64, scratch_operands = 0 : i64, tpu.core_type = #tpu.core_type<tc>, window_params = [{transform_indices = @transform_0, window_bounds = array<i64: 1, 16, 64>}, {pipeline_mode = #tpu.pipeline_mode<synchronous>, transform_indices = @transform_1, window_bounds = array<i64: 64, 64>}, {pipeline_mode = #tpu.pipeline_mode<synchronous>, transform_indices = @transform_2, window_bounds = array<i64: 1, 64>}, {pipeline_mode = #tpu.pipeline_mode<synchronous>, transform_indices = @transform_3, window_bounds = array<i64: 64, 64>}, {pipeline_mode = #tpu.pipeline_mode<synchronous>, transform_indices = @transform_4, window_bounds = array<i64: 1, 64>}, {pipeline_mode = #tpu.pipeline_mode<synchronous>, transform_indices = @transform_5, window_bounds = array<i64: 64, 512>}, {pipeline_mode = #tpu.pipeline_mode<synchronous>, transform_indices = @transform_6, window_bounds = array<i64: 64, 512>}, {pipeline_mode = #tpu.pipeline_mode<synchronous>, transform_indices = @transform_7, window_bounds = array<i64: 3, 64, 512>}, {pipeline_mode = #tpu.pipeline_mode<synchronous>, transform_indices = @transform_8, window_bounds = array<i64: 5, 64, 512>}, {pipeline_mode = #tpu.pipeline_mode<synchronous>, transform_indices = @transform_9, window_bounds = array<i64: 1, 512>}, {transform_indices = @transform_10, window_bounds = array<i64: 1, 16, 512>}]} {
    %c0 = arith.constant 0 : index
    %c0_0 = arith.constant 0 : index
    %c0_1 = arith.constant 0 : index
    %0 = vector.load %arg1[%c0, %c0_0, %c0_1] : memref<1x16x64xbf16, #tpu.memory_space<vmem>>, vector<1x16x64xbf16>
    %1 = vector.shape_cast %0 : vector<1x16x64xbf16> to vector<16x64xbf16>
    %c0_2 = arith.constant 0 : index
    %c0_3 = arith.constant 0 : index
    %2 = vector.load %arg6[%c0_2, %c0_3] : memref<64x512xbf16, #tpu.memory_space<vmem>>, vector<64x512xbf16>
    %cst = arith.constant dense<0.000000e+00> : vector<16x512xf32>
    %3 = tpu.matmul %1, %2, %cst {dimension_numbers = #tpu.dot_dimension_numbers<[1], [0], [0], [1], [0, 0, 1, 1], [], []>} : vector<16x64xbf16>, vector<64x512xbf16>, vector<16x512xf32> -> vector<16x512xf32>
    %cst_4 = arith.constant 0xFF80 : bf16
    %4 = vector.broadcast %cst_4 : bf16 to vector<1x16x4xbf16>
    %5 = tpu.concatenate %4, %0, %4 in 2 : vector<1x16x4xbf16>, vector<1x16x64xbf16>, vector<1x16x4xbf16> -> vector<1x16x72xbf16>
    %cst_5 = arith.constant 0xFF80 : bf16
    %6 = vector.broadcast %cst_5 : bf16 to vector<1x1x72xbf16>
    %7 = tpu.concatenate %6, %5, %6 in 1 : vector<1x1x72xbf16>, vector<1x16x72xbf16>, vector<1x1x72xbf16> -> vector<1x18x72xbf16>
    %8 = vector.extract_strided_slice %7 {offsets = [0, 1, 4], sizes = [1, 16, 64], strides = [1, 1, 1]} : vector<1x18x72xbf16> to vector<1x16x64xbf16>
    %9 = vector.extract_strided_slice %7 {offsets = [0, 0, 0], sizes = [1, 16, 64], strides = [1, 1, 1]} : vector<1x18x72xbf16> to vector<1x16x64xbf16>
    %10 = arith.maximumf %8, %9 : vector<1x16x64xbf16>
    %11 = vector.extract_strided_slice %7 {offsets = [0, 0, 4], sizes = [1, 16, 64], strides = [1, 1, 1]} : vector<1x18x72xbf16> to vector<1x16x64xbf16>
    %12 = arith.maximumf %10, %11 : vector<1x16x64xbf16>
    %13 = vector.extract_strided_slice %7 {offsets = [0, 0, 8], sizes = [1, 16, 64], strides = [1, 1, 1]} : vector<1x18x72xbf16> to vector<1x16x64xbf16>
    %14 = arith.maximumf %12, %13 : vector<1x16x64xbf16>
    %15 = vector.extract_strided_slice %7 {offsets = [0, 1, 0], sizes = [1, 16, 64], strides = [1, 1, 1]} : vector<1x18x72xbf16> to vector<1x16x64xbf16>
    %16 = arith.maximumf %14, %15 : vector<1x16x64xbf16>
    %17 = vector.extract_strided_slice %7 {offsets = [0, 1, 8], sizes = [1, 16, 64], strides = [1, 1, 1]} : vector<1x18x72xbf16> to vector<1x16x64xbf16>
    %18 = arith.maximumf %16, %17 : vector<1x16x64xbf16>
    %19 = vector.extract_strided_slice %7 {offsets = [0, 2, 0], sizes = [1, 16, 64], strides = [1, 1, 1]} : vector<1x18x72xbf16> to vector<1x16x64xbf16>
    %20 = arith.maximumf %18, %19 : vector<1x16x64xbf16>
    %21 = vector.extract_strided_slice %7 {offsets = [0, 2, 4], sizes = [1, 16, 64], strides = [1, 1, 1]} : vector<1x18x72xbf16> to vector<1x16x64xbf16>
    %22 = arith.maximumf %20, %21 : vector<1x16x64xbf16>
    %23 = vector.extract_strided_slice %7 {offsets = [0, 2, 8], sizes = [1, 16, 64], strides = [1, 1, 1]} : vector<1x18x72xbf16> to vector<1x16x64xbf16>
    %24 = arith.maximumf %22, %23 : vector<1x16x64xbf16>
    %25 = vector.shape_cast %24 : vector<1x16x64xbf16> to vector<16x64xbf16>
    %c0_6 = arith.constant 0 : index
    %c0_7 = arith.constant 0 : index
    %26 = vector.load %arg7[%c0_6, %c0_7] : memref<64x512xbf16, #tpu.memory_space<vmem>>, vector<64x512xbf16>
    %cst_8 = arith.constant dense<0.000000e+00> : vector<16x512xf32>
    %27 = tpu.matmul %25, %26, %cst_8 {dimension_numbers = #tpu.dot_dimension_numbers<[1], [0], [0], [1], [0, 0, 1, 1], [], []>} : vector<16x64xbf16>, vector<64x512xbf16>, vector<16x512xf32> -> vector<16x512xf32>
    %28 = arith.addf %3, %27 : vector<16x512xf32>
    %c0_9 = arith.constant 0 : index
    %c0_10 = arith.constant 0 : index
    %29 = vector.load %arg2[%c0_9, %c0_10] : memref<64x64xbf16, #tpu.memory_space<vmem>>, vector<64x64xbf16>
    %cst_11 = arith.constant dense<0.000000e+00> : vector<16x64xf32>
    %30 = tpu.matmul %1, %29, %cst_11 {dimension_numbers = #tpu.dot_dimension_numbers<[1], [0], [0], [1], [0, 0, 1, 1], [], []>} : vector<16x64xbf16>, vector<64x64xbf16>, vector<16x64xf32> -> vector<16x64xf32>
    %c0_12 = arith.constant 0 : index
    %c0_13 = arith.constant 0 : index
    %31 = vector.load %arg3[%c0_12, %c0_13] : memref<1x64xf32, #tpu.memory_space<vmem>>, vector<1x64xf32>
    %32 = vector.broadcast %31 : vector<1x64xf32> to vector<16x64xf32>
    %33 = arith.addf %30, %32 : vector<16x64xf32>
    %cst_14 = arith.constant 0.000000e+00 : f32
    %34 = vector.broadcast %cst_14 : f32 to vector<16x64xf32>
    %35 = arith.maximumf %33, %34 : vector<16x64xf32>
    %36 = arith.truncf %35 : vector<16x64xf32> to vector<16x64xbf16>
    %cst_15 = arith.constant 0.000000e+00 : bf16
    %37 = vector.broadcast %cst_15 : bf16 to vector<1x1x64xbf16>
    %38 = vector.shape_cast %36 : vector<16x64xbf16> to vector<1x16x64xbf16>
    %39 = tpu.concatenate %37, %38, %37 in 1 : vector<1x1x64xbf16>, vector<1x16x64xbf16>, vector<1x1x64xbf16> -> vector<1x18x64xbf16>
    %40 = vector.extract_strided_slice %39 {offsets = [0, 0, 0], sizes = [1, 16, 64], strides = [1, 1, 1]} : vector<1x18x64xbf16> to vector<1x16x64xbf16>
    %41 = vector.shape_cast %40 : vector<1x16x64xbf16> to vector<16x64xbf16>
    %c0_16 = arith.constant 0 : index
    %c0_17 = arith.constant 0 : index
    %c0_18 = arith.constant 0 : index
    %42 = vector.load %arg8[%c0_16, %c0_17, %c0_18] : memref<3x64x512xbf16, #tpu.memory_space<vmem>>, vector<1x64x512xbf16>
    %43 = vector.shape_cast %42 : vector<1x64x512xbf16> to vector<64x512xbf16>
    %cst_19 = arith.constant dense<0.000000e+00> : vector<16x512xf32>
    %44 = tpu.matmul %41, %43, %cst_19 {dimension_numbers = #tpu.dot_dimension_numbers<[1], [0], [0], [1], [0, 0, 1, 1], [], []>} : vector<16x64xbf16>, vector<64x512xbf16>, vector<16x512xf32> -> vector<16x512xf32>
    %45 = arith.addf %28, %44 : vector<16x512xf32>
    %46 = vector.extract_strided_slice %39 {offsets = [0, 1, 0], sizes = [1, 16, 64], strides = [1, 1, 1]} : vector<1x18x64xbf16> to vector<1x16x64xbf16>
    %47 = vector.shape_cast %46 : vector<1x16x64xbf16> to vector<16x64xbf16>
    %c1 = arith.constant 1 : index
    %c0_20 = arith.constant 0 : index
    %c0_21 = arith.constant 0 : index
    %48 = vector.load %arg8[%c1, %c0_20, %c0_21] : memref<3x64x512xbf16, #tpu.memory_space<vmem>>, vector<1x64x512xbf16>
    %49 = vector.shape_cast %48 : vector<1x64x512xbf16> to vector<64x512xbf16>
    %cst_22 = arith.constant dense<0.000000e+00> : vector<16x512xf32>
    %50 = tpu.matmul %47, %49, %cst_22 {dimension_numbers = #tpu.dot_dimension_numbers<[1], [0], [0], [1], [0, 0, 1, 1], [], []>} : vector<16x64xbf16>, vector<64x512xbf16>, vector<16x512xf32> -> vector<16x512xf32>
    %51 = arith.addf %45, %50 : vector<16x512xf32>
    %52 = vector.extract_strided_slice %39 {offsets = [0, 2, 0], sizes = [1, 16, 64], strides = [1, 1, 1]} : vector<1x18x64xbf16> to vector<1x16x64xbf16>
    %53 = vector.shape_cast %52 : vector<1x16x64xbf16> to vector<16x64xbf16>
    %c2 = arith.constant 2 : index
    %c0_23 = arith.constant 0 : index
    %c0_24 = arith.constant 0 : index
    %54 = vector.load %arg8[%c2, %c0_23, %c0_24] : memref<3x64x512xbf16, #tpu.memory_space<vmem>>, vector<1x64x512xbf16>
    %55 = vector.shape_cast %54 : vector<1x64x512xbf16> to vector<64x512xbf16>
    %cst_25 = arith.constant dense<0.000000e+00> : vector<16x512xf32>
    %56 = tpu.matmul %53, %55, %cst_25 {dimension_numbers = #tpu.dot_dimension_numbers<[1], [0], [0], [1], [0, 0, 1, 1], [], []>} : vector<16x64xbf16>, vector<64x512xbf16>, vector<16x512xf32> -> vector<16x512xf32>
    %57 = arith.addf %51, %56 : vector<16x512xf32>
    %c0_26 = arith.constant 0 : index
    %c0_27 = arith.constant 0 : index
    %58 = vector.load %arg4[%c0_26, %c0_27] : memref<64x64xbf16, #tpu.memory_space<vmem>>, vector<64x64xbf16>
    %cst_28 = arith.constant dense<0.000000e+00> : vector<16x64xf32>
    %59 = tpu.matmul %1, %58, %cst_28 {dimension_numbers = #tpu.dot_dimension_numbers<[1], [0], [0], [1], [0, 0, 1, 1], [], []>} : vector<16x64xbf16>, vector<64x64xbf16>, vector<16x64xf32> -> vector<16x64xf32>
    %c0_29 = arith.constant 0 : index
    %c0_30 = arith.constant 0 : index
    %60 = vector.load %arg5[%c0_29, %c0_30] : memref<1x64xf32, #tpu.memory_space<vmem>>, vector<1x64xf32>
    %61 = vector.broadcast %60 : vector<1x64xf32> to vector<16x64xf32>
    %62 = arith.addf %59, %61 : vector<16x64xf32>
    %cst_31 = arith.constant 0.000000e+00 : f32
    %63 = vector.broadcast %cst_31 : f32 to vector<16x64xf32>
    %64 = arith.maximumf %62, %63 : vector<16x64xf32>
    %65 = arith.truncf %64 : vector<16x64xf32> to vector<16x64xbf16>
    %cst_32 = arith.constant 0.000000e+00 : bf16
    %66 = vector.broadcast %cst_32 : bf16 to vector<1x2x64xbf16>
    %67 = vector.shape_cast %65 : vector<16x64xbf16> to vector<1x16x64xbf16>
    %68 = tpu.concatenate %66, %67, %66 in 1 : vector<1x2x64xbf16>, vector<1x16x64xbf16>, vector<1x2x64xbf16> -> vector<1x20x64xbf16>
    %69 = vector.extract_strided_slice %68 {offsets = [0, 0, 0], sizes = [1, 16, 64], strides = [1, 1, 1]} : vector<1x20x64xbf16> to vector<1x16x64xbf16>
    %70 = vector.shape_cast %69 : vector<1x16x64xbf16> to vector<16x64xbf16>
    %c0_33 = arith.constant 0 : index
    %c0_34 = arith.constant 0 : index
    %c0_35 = arith.constant 0 : index
    %71 = vector.load %arg9[%c0_33, %c0_34, %c0_35] : memref<5x64x512xbf16, #tpu.memory_space<vmem>>, vector<1x64x512xbf16>
    %72 = vector.shape_cast %71 : vector<1x64x512xbf16> to vector<64x512xbf16>
    %cst_36 = arith.constant dense<0.000000e+00> : vector<16x512xf32>
    %73 = tpu.matmul %70, %72, %cst_36 {dimension_numbers = #tpu.dot_dimension_numbers<[1], [0], [0], [1], [0, 0, 1, 1], [], []>} : vector<16x64xbf16>, vector<64x512xbf16>, vector<16x512xf32> -> vector<16x512xf32>
    %74 = arith.addf %57, %73 : vector<16x512xf32>
    %75 = vector.extract_strided_slice %68 {offsets = [0, 1, 0], sizes = [1, 16, 64], strides = [1, 1, 1]} : vector<1x20x64xbf16> to vector<1x16x64xbf16>
    %76 = vector.shape_cast %75 : vector<1x16x64xbf16> to vector<16x64xbf16>
    %c1_37 = arith.constant 1 : index
    %c0_38 = arith.constant 0 : index
    %c0_39 = arith.constant 0 : index
    %77 = vector.load %arg9[%c1_37, %c0_38, %c0_39] : memref<5x64x512xbf16, #tpu.memory_space<vmem>>, vector<1x64x512xbf16>
    %78 = vector.shape_cast %77 : vector<1x64x512xbf16> to vector<64x512xbf16>
    %cst_40 = arith.constant dense<0.000000e+00> : vector<16x512xf32>
    %79 = tpu.matmul %76, %78, %cst_40 {dimension_numbers = #tpu.dot_dimension_numbers<[1], [0], [0], [1], [0, 0, 1, 1], [], []>} : vector<16x64xbf16>, vector<64x512xbf16>, vector<16x512xf32> -> vector<16x512xf32>
    %80 = arith.addf %74, %79 : vector<16x512xf32>
    %81 = vector.extract_strided_slice %68 {offsets = [0, 2, 0], sizes = [1, 16, 64], strides = [1, 1, 1]} : vector<1x20x64xbf16> to vector<1x16x64xbf16>
    %82 = vector.shape_cast %81 : vector<1x16x64xbf16> to vector<16x64xbf16>
    %c2_41 = arith.constant 2 : index
    %c0_42 = arith.constant 0 : index
    %c0_43 = arith.constant 0 : index
    %83 = vector.load %arg9[%c2_41, %c0_42, %c0_43] : memref<5x64x512xbf16, #tpu.memory_space<vmem>>, vector<1x64x512xbf16>
    %84 = vector.shape_cast %83 : vector<1x64x512xbf16> to vector<64x512xbf16>
    %cst_44 = arith.constant dense<0.000000e+00> : vector<16x512xf32>
    %85 = tpu.matmul %82, %84, %cst_44 {dimension_numbers = #tpu.dot_dimension_numbers<[1], [0], [0], [1], [0, 0, 1, 1], [], []>} : vector<16x64xbf16>, vector<64x512xbf16>, vector<16x512xf32> -> vector<16x512xf32>
    %86 = arith.addf %80, %85 : vector<16x512xf32>
    %87 = vector.extract_strided_slice %68 {offsets = [0, 3, 0], sizes = [1, 16, 64], strides = [1, 1, 1]} : vector<1x20x64xbf16> to vector<1x16x64xbf16>
    %88 = vector.shape_cast %87 : vector<1x16x64xbf16> to vector<16x64xbf16>
    %c3 = arith.constant 3 : index
    %c0_45 = arith.constant 0 : index
    %c0_46 = arith.constant 0 : index
    %89 = vector.load %arg9[%c3, %c0_45, %c0_46] : memref<5x64x512xbf16, #tpu.memory_space<vmem>>, vector<1x64x512xbf16>
    %90 = vector.shape_cast %89 : vector<1x64x512xbf16> to vector<64x512xbf16>
    %cst_47 = arith.constant dense<0.000000e+00> : vector<16x512xf32>
    %91 = tpu.matmul %88, %90, %cst_47 {dimension_numbers = #tpu.dot_dimension_numbers<[1], [0], [0], [1], [0, 0, 1, 1], [], []>} : vector<16x64xbf16>, vector<64x512xbf16>, vector<16x512xf32> -> vector<16x512xf32>
    %92 = arith.addf %86, %91 : vector<16x512xf32>
    %93 = vector.extract_strided_slice %68 {offsets = [0, 4, 0], sizes = [1, 16, 64], strides = [1, 1, 1]} : vector<1x20x64xbf16> to vector<1x16x64xbf16>
    %94 = vector.shape_cast %93 : vector<1x16x64xbf16> to vector<16x64xbf16>
    %c4 = arith.constant 4 : index
    %c0_48 = arith.constant 0 : index
    %c0_49 = arith.constant 0 : index
    %95 = vector.load %arg9[%c4, %c0_48, %c0_49] : memref<5x64x512xbf16, #tpu.memory_space<vmem>>, vector<1x64x512xbf16>
    %96 = vector.shape_cast %95 : vector<1x64x512xbf16> to vector<64x512xbf16>
    %cst_50 = arith.constant dense<0.000000e+00> : vector<16x512xf32>
    %97 = tpu.matmul %94, %96, %cst_50 {dimension_numbers = #tpu.dot_dimension_numbers<[1], [0], [0], [1], [0, 0, 1, 1], [], []>} : vector<16x64xbf16>, vector<64x512xbf16>, vector<16x512xf32> -> vector<16x512xf32>
    %98 = arith.addf %92, %97 : vector<16x512xf32>
    %c0_51 = arith.constant 0 : index
    %c0_52 = arith.constant 0 : index
    %99 = vector.load %arg10[%c0_51, %c0_52] : memref<1x512xf32, #tpu.memory_space<vmem>>, vector<1x512xf32>
    %100 = vector.broadcast %99 : vector<1x512xf32> to vector<16x512xf32>
    %101 = arith.addf %98, %100 : vector<16x512xf32>
    %cst_53 = arith.constant 0.000000e+00 : f32
    %102 = vector.broadcast %cst_53 : f32 to vector<16x512xf32>
    %103 = arith.maximumf %101, %102 : vector<16x512xf32>
    %104 = vector.shape_cast %103 : vector<16x512xf32> to vector<1x16x512xf32>
    %c0_54 = arith.constant 0 : index
    %c0_55 = arith.constant 0 : index
    %c0_56 = arith.constant 0 : index
    %105 = vector.load %arg11[%c0_54, %c0_55, %c0_56] : memref<1x16x512xf32, #tpu.memory_space<vmem>>, vector<1x16x512xf32>
    tpu.vector_store %arg11[%c0_54, %c0_55, %c0_56], %104 {strides = array<i32>} : memref<1x16x512xf32, #tpu.memory_space<vmem>>, vector<1x16x512xf32>,
    return
  }
  func.func @transform_0(%arg0: i32) -> (i32, i32, i32) {
    %c0_i32 = arith.constant 0 : i32
    %c0_i32_0 = arith.constant 0 : i32
    %c0_i32_1 = arith.constant 0 : i32
    return %arg0, %c0_i32, %c0_i32_0 : i32, i32, i32
  }
  func.func @transform_1(%arg0: i32) -> (i32, i32) {
    %c0_i32 = arith.constant 0 : i32
    %c0_i32_0 = arith.constant 0 : i32
    %c0_i32_1 = arith.constant 0 : i32
    return %c0_i32, %c0_i32_0 : i32, i32
  }
  func.func @transform_2(%arg0: i32) -> (i32, i32) {
    %c0_i32 = arith.constant 0 : i32
    %c0_i32_0 = arith.constant 0 : i32
    %c0_i32_1 = arith.constant 0 : i32
    return %c0_i32, %c0_i32_0 : i32, i32
  }
  func.func @transform_3(%arg0: i32) -> (i32, i32) {
    %c0_i32 = arith.constant 0 : i32
    %c0_i32_0 = arith.constant 0 : i32
    %c0_i32_1 = arith.constant 0 : i32
    return %c0_i32, %c0_i32_0 : i32, i32
  }
  func.func @transform_4(%arg0: i32) -> (i32, i32) {
    %c0_i32 = arith.constant 0 : i32
    %c0_i32_0 = arith.constant 0 : i32
    %c0_i32_1 = arith.constant 0 : i32
    return %c0_i32, %c0_i32_0 : i32, i32
  }
  func.func @transform_5(%arg0: i32) -> (i32, i32) {
    %c0_i32 = arith.constant 0 : i32
    %c0_i32_0 = arith.constant 0 : i32
    %c0_i32_1 = arith.constant 0 : i32
    return %c0_i32, %c0_i32_0 : i32, i32
  }
  func.func @transform_6(%arg0: i32) -> (i32, i32) {
    %c0_i32 = arith.constant 0 : i32
    %c0_i32_0 = arith.constant 0 : i32
    %c0_i32_1 = arith.constant 0 : i32
    return %c0_i32, %c0_i32_0 : i32, i32
  }
  func.func @transform_7(%arg0: i32) -> (i32, i32, i32) {
    %c0_i32 = arith.constant 0 : i32
    %c0_i32_0 = arith.constant 0 : i32
    %c0_i32_1 = arith.constant 0 : i32
    %c0_i32_2 = arith.constant 0 : i32
    return %c0_i32, %c0_i32_0, %c0_i32_1 : i32, i32, i32
  }
  func.func @transform_8(%arg0: i32) -> (i32, i32, i32) {
    %c0_i32 = arith.constant 0 : i32
    %c0_i32_0 = arith.constant 0 : i32
    %c0_i32_1 = arith.constant 0 : i32
    %c0_i32_2 = arith.constant 0 : i32
    return %c0_i32, %c0_i32_0, %c0_i32_1 : i32, i32, i32
  }
  func.func @transform_9(%arg0: i32) -> (i32, i32) {
    %c0_i32 = arith.constant 0 : i32
    %c0_i32_0 = arith.constant 0 : i32
    %c0_i32_1 = arith.constant 0 : i32
    return %c0_i32, %c0_i32_0 : i32, i32
  }
  func.func @transform_10(%arg0: i32) -> (i32, i32, i32) {
    %c0_i32 = arith.constant 0 : i32
    %c0_i32_0 = arith.constant 0 : i32
    %c0_i32_1 = arith.constant 0 : i32
    return %arg0, %c0_i32, %c0_i32_0 : i32, i32, i32
  }
}

</mosaic_0001>

<bundles_post_ra>
// kernel: tile.28
= control target key start
LH: loop header
LB: loop body
LE: loop exit
PB: predicated region body
PF: predicated region fallthrough
CT: control target
= control target key end

     0   :  { %s28_s0 = inlined_call_operand.vmem [shape: f32[32], index: 0, kind: input, shape index: {}]   ;;  %s29_s1 = inlined_call_operand.vmem [shape: f32[16,32], index: 1, kind: output, shape index: {}]  }
   0x1   :  { %v4_v0 = vld [vmem:[%s28_s0] ss:$0 sm:$0xff] }
   0x2   :  { %5 = vst [vmem:[%s29_s1] sm:$0xff] %v4_v0  ;;  %8 = vst [vmem:[%s29_s1 + $0x8] sm:$0xff] %v4_v0 }

// kernel: tile.18
= control target key start
LH: loop header
LB: loop body
LE: loop exit
PB: predicated region body
PF: predicated region fallthrough
CT: control target
= control target key end

     0   :  { %s28_s0 = inlined_call_operand.vmem [shape: f32[4], index: 0, kind: input, shape index: {}]   ;;  %s29_s1 = inlined_call_operand.vmem [shape: f32[16,4], index: 1, kind: output, shape index: {}]  }
   0x1   :  { %v4_v0 = vld [vmem:[%s28_s0] ss:$0 sm:$0xff] }
   0x2   :  { %5 = vst [vmem:[%s29_s1] sm:$0xff] %v4_v0  ;;  %8 = vst [vmem:[%s29_s1 + $0x8] sm:$0xff] %v4_v0 }

// kernel: tile.29
= control target key start
LH: loop header
LB: loop body
LE: loop exit
PB: predicated region body
PF: predicated region fallthrough
CT: control target
= control target key end

     0   :  { %s57_s8 = smov 96   ;;  %vm3_vm0 = vcmask 261120   ;;  %s59_s15 = smov 64   ;;  %vm9_vm1 = vcmask 1048320   ;;  %vm15_vm2 = vcmask 785920   ;;  %vm21_vm3 = vcmask 523520   ;;  %s94_s0 = inlined_call_operand.vmem [shape: f32[16,32], index: 0, kind: input, shape index: {}]   ;;  %s95_s1 = inlined_call_operand.vmem [shape: f32[1,512], index: 1, kind: output, shape index: {}]  }
   0x1   :  { %v48_v0 = vld [vmem:[%s94_s0 + $0x3] ss:$4 sm:$0xf]   ;;  %v49_v1 = vld [vmem:[%s94_s0 + $0x2] ss:$4 sm:$0xf]  }
   0x2   :  { %7 = vrot.lane.b32.xlu0 %v48_v0, %s57_s8  ;;  %v50_v2 = vld [vmem:[%s94_s0 + $0x1] ss:$4 sm:$0xf]   ;;  %v2_v3 = vld [vmem:[%s94_s0] ss:$4 sm:$0xf]  }
   0x3   :  { %s58_s0 = smov 32   ;;  %4 = vst.msk [vmem:[#allocation0] ss:$8 sm:$0xf] %vm3_vm0, %v2_v3  }
   0x4   :  { %19 = vrot.lane.b32.xlu1 %v50_v2, %s58_s0 }
   0x6   :  { %13 = vrot.lane.b32.xlu0 %v49_v1, %s59_s15 }
  0x74   :  { %v8_v4 = vpop.permute.xlu0 %7  }
  0x75   :  { %10 = vst.msk [vmem:[#allocation0] ss:$8 sm:$0xf] %vm9_vm1, %v8_v4  }
  0x76   :  { %v20_v5 = vpop.permute.xlu1 %19  }
  0x78   :  { %v14_v6 = vpop.permute.xlu0 %13  }
  0x79   :  { %16 = vst.msk [vmem:[#allocation0] ss:$8 sm:$0xf] %vm15_vm2, %v14_v6  }
  0x7a   :  { %22 = vst.msk [vmem:[#allocation0] ss:$8 sm:$0xf] %vm21_vm3, %v20_v5  }
  0x81   :  { %v26_v7 = vld [vmem:[#allocation0] sm:$0x1]  ;;  %v30_v8 = vld [vmem:[#allocation0 + $0x8] sm:$0x1]  ;;  %v35_v9 = vld [vmem:[#allocation0 + $0x10] sm:$0x1] }
  0x82   :  { %28 = vst [vmem:[%s95_s1] sm:$0x1] %v26_v7  ;;  %51 = vst [vmem:[%s95_s1 + $0x1] sm:$0x1] %v30_v8  ;;  %v41_v10 = vld [vmem:[#allocation0 + $0x18] sm:$0x1] }
  0x83   :  { %52 = vst [vmem:[%s95_s1 + $0x2] sm:$0x1] %v35_v9  ;;  %53 = vst [vmem:[%s95_s1 + $0x3] sm:$0x1] %v41_v10 }

// kernel: tile.19
= control target key start
LH: loop header
LB: loop body
LE: loop exit
PB: predicated region body
PF: predicated region fallthrough
CT: control target
= control target key end

     0   :  { %s131_s10 = smov 60   ;;  %s132_s11 = smov 52   ;;  %vm3_vm0 = vcmask 31744   ;;  %vm9_vm1 = vcmask 523744   ;;  %vm15_vm2 = vcmask 490944   ;;  %vm21_vm3 = vcmask 458144   ;;  %s207_s0 = inlined_call_operand.vmem [shape: f32[16,4], index: 0, kind: input, shape index: {}]   ;;  %s208_s1 = inlined_call_operand.vmem [shape: f32[1,64], index: 1, kind: output, shape index: {}]  }
   0x1   :  { %v101_v0 = vld [vmem:[%s207_s0 + $0xf] sm:$0x1]   ;;  %v103_v1 = vld [vmem:[%s207_s0 + $0xd] sm:$0x1]   ;;  %v102_v2 = vld [vmem:[%s207_s0 + $0xe] sm:$0x1]  }
   0x2   :  { %7 = vrot.lane.b32.xlu0 %v101_v0, %s131_s10  ;;  %19 = vrot.lane.b32.xlu1 %v103_v1, %s132_s11  ;;  %v104_v3 = vld [vmem:[%s207_s0 + $0xc] sm:$0x1]   ;;  %s133_s16 = smov 56   ;;  %s134_s17 = smov 48   ;;  %v105_v4 = vld [vmem:[%s207_s0 + $0xb] sm:$0x1]  }
   0x3   :  { %v106_v5 = vld [vmem:[%s207_s0 + $0xa] sm:$0x1]   ;;  %v2_v6 = vld [vmem:[%s207_s0] sm:$0x1]   ;;  %s135_s24 = smov 44   ;;  %s136_s25 = smov 40  }
   0x4   :  { %4 = vst.msk [vmem:[#allocation0] sm:$0x1] %vm3_vm0, %v2_v6   ;;  %v107_v7 = vld [vmem:[%s207_s0 + $0x9] sm:$0x1]   ;;  %v108_v8 = vld [vmem:[%s207_s0 + $0x8] sm:$0x1]  }
   0x5   :  { %s137_s30 = smov 36   ;;  %s138_s2 = smov 32   ;;  %v109_v9 = vld [vmem:[%s207_s0 + $0x7] sm:$0x1]   ;;  %v110_v10 = vld [vmem:[%s207_s0 + $0x6] sm:$0x1]  }
   0x6   :  { %13 = vrot.lane.b32.xlu0 %v102_v2, %s133_s16  ;;  %25 = vrot.lane.b32.xlu1 %v104_v3, %s134_s17  ;;  %s139_s7 = smov 28   ;;  %s140_s8 = smov 24   ;;  %v111_v11 = vld [vmem:[%s207_s0 + $0x5] sm:$0x1]   ;;  %v112_v12 = vld [vmem:[%s207_s0 + $0x4] sm:$0x1]  }
   0x7   :  { %s141_s13 = smov 20   ;;  %s142_s14 = smov 16   ;;  %v113_v13 = vld [vmem:[%s207_s0 + $0x3] sm:$0x1]   ;;  %v114_v14 = vld [vmem:[%s207_s0 + $0x2] sm:$0x1]  }
   0x8   :  { %s143_s19 = smov 12   ;;  %s144_s20 = smov 8   ;;  %v115_v15 = vld [vmem:[%s207_s0 + $0x1] sm:$0x1]   ;;  %vm27_vm4 = vcmask 425344   ;;  %vm33_vm5 = vcmask 392544  }
   0x9   :  { %s145_s0 = smov 4   ;;  %vm39_vm6 = vcmask 359744   ;;  %vm45_vm7 = vcmask 326944   ;;  %vm51_vm8 = vcmask 294144   ;;  %vm57_vm9 = vcmask 261344  }
   0xa   :  { %31 = vrot.lane.b32.xlu0 %v105_v4, %s135_s24  ;;  %37 = vrot.lane.b32.xlu1 %v106_v5, %s136_s25  ;;  %vm63_vm10 = vcmask 228544   ;;  %vm69_vm11 = vcmask 195744   ;;  %vm75_vm12 = vcmask 162944   ;;  %vm81_vm13 = vcmask 130144  }
   0xb   :  { %vm87_vm14 = vcmask 97344   ;;  %vm93_vm15 = vcmask 64544  }
   0xe   :  { %43 = vrot.lane.b32.xlu0 %v107_v7, %s137_s30  ;;  %49 = vrot.lane.b32.xlu1 %v108_v8, %s138_s2 }
  0x12   :  { %55 = vrot.lane.b32.xlu0 %v109_v9, %s139_s7  ;;  %61 = vrot.lane.b32.xlu1 %v110_v10, %s140_s8 }
  0x16   :  { %67 = vrot.lane.b32.xlu0 %v111_v11, %s141_s13  ;;  %73 = vrot.lane.b32.xlu1 %v112_v12, %s142_s14 }
  0x1a   :  { %79 = vrot.lane.b32.xlu0 %v113_v13, %s143_s19  ;;  %85 = vrot.lane.b32.xlu1 %v114_v14, %s144_s20 }
  0x1e   :  { %91 = vrot.lane.b32.xlu0 %v115_v15, %s145_s0 }
  0x74   :  { %v8_v16 = vpop.permute.xlu0 %7   ;;  %v20_v17 = vpop.permute.xlu1 %19  }
  0x75   :  { %10 = vst.msk [vmem:[#allocation0] sm:$0x1] %vm9_vm1, %v8_v16  }
  0x78   :  { %v14_v18 = vpop.permute.xlu0 %13   ;;  %v26_v19 = vpop.permute.xlu1 %25  }
  0x79   :  { %16 = vst.msk [vmem:[#allocation0] sm:$0x1] %vm15_vm2, %v14_v18  }
  0x7a   :  { %22 = vst.msk [vmem:[#allocation0] sm:$0x1] %vm21_vm3, %v20_v17  }
  0x7b   :  { %28 = vst.msk [vmem:[#allocation0] sm:$0x1] %vm27_vm4, %v26_v19  }
  0x7c   :  { %v32_v20 = vpop.permute.xlu0 %31   ;;  %v38_v21 = vpop.permute.xlu1 %37  }
  0x7d   :  { %34 = vst.msk [vmem:[#allocation0] sm:$0x1] %vm33_vm5, %v32_v20  }
  0x7e   :  { %40 = vst.msk [vmem:[#allocation0] sm:$0x1] %vm39_vm6, %v38_v21  }
  0x80   :  { %v44_v22 = vpop.permute.xlu0 %43   ;;  %v50_v23 = vpop.permute.xlu1 %49  }
  0x81   :  { %46 = vst.msk [vmem:[#allocation0] sm:$0x1] %vm45_vm7, %v44_v22  }
  0x82   :  { %52 = vst.msk [vmem:[#allocation0] sm:$0x1] %vm51_vm8, %v50_v23  }
  0x84   :  { %v56_v24 = vpop.permute.xlu0 %55   ;;  %v62_v25 = vpop.permute.xlu1 %61  }
  0x85   :  { %58 = vst.msk [vmem:[#allocation0] sm:$0x1] %vm57_vm9, %v56_v24  }
  0x86   :  { %64 = vst.msk [vmem:[#allocation0] sm:$0x1] %vm63_vm10, %v62_v25  }
  0x88   :  { %v68_v26 = vpop.permute.xlu0 %67   ;;  %v74_v27 = vpop.permute.xlu1 %73  }
  0x89   :  { %70 = vst.msk [vmem:[#allocation0] sm:$0x1] %vm69_vm11, %v68_v26  }
  0x8a   :  { %76 = vst.msk [vmem:[#allocation0] sm:$0x1] %vm75_vm12, %v74_v27  }
  0x8c   :  { %v80_v28 = vpop.permute.xlu0 %79   ;;  %v86_v29 = vpop.permute.xlu1 %85  }
  0x8d   :  { %82 = vst.msk [vmem:[#allocation0] sm:$0x1] %vm81_vm13, %v80_v28  }
  0x8e   :  { %88 = vst.msk [vmem:[#allocation0] sm:$0x1] %vm87_vm14, %v86_v29  }
  0x90   :  { %v92_v30 = vpop.permute.xlu0 %91  }
  0x91   :  { %94 = vst.msk [vmem:[#allocation0] sm:$0x1] %vm93_vm15, %v92_v30  }
  0x98   :  { %v98_v31 = vld [vmem:[#allocation0] sm:$0x1] }
  0x99   :  { %100 = vst [vmem:[%s208_s1] sm:$0x1] %v98_v31 }

// kernel: inception_forward.1
= control target key start
LH: loop header
LB: loop body
LE: loop exit
PB: predicated region body
PF: predicated region fallthrough
CT: control target
= control target key end

     0   :  { %s3468_s13 = smov 0   ;;  %s4165_s0 = inlined_call_operand.vmem [shape: bf16[2,16,64], index: 0, kind: input, shape index: {}]   ;;  %s4166_s1 = inlined_call_operand.vmem [shape: bf16[64,64], index: 1, kind: input, shape index: {}]   ;;  %s4167_s2 = inlined_call_operand.vmem [shape: f32[1,64], index: 2, kind: input, shape index: {}]   ;;  %s4168_s3 = inlined_call_operand.vmem [shape: bf16[64,64], index: 3, kind: input, shape index: {}]   ;;  %s4169_s4 = inlined_call_operand.vmem [shape: f32[1,64], index: 4, kind: input, shape index: {}]   ;;  %s4170_s5 = inlined_call_operand.vmem [shape: bf16[64,512], index: 5, kind: input, shape index: {}]   ;;  %s4171_s6 = inlined_call_operand.vmem [shape: bf16[64,512], index: 6, kind: input, shape index: {}]   ;;  %s4172_s7 = inlined_call_operand.vmem [shape: bf16[3,64,512], index: 7, kind: input, shape index: {}]   ;;  %s4173_s8 = inlined_call_operand.vmem [shape: bf16[5,64,512], index: 8, kind: input, shape index: {}]   ;;  %s4174_s9 = inlined_call_operand.vmem [shape: f32[1,512], index: 9, kind: input, shape index: {}]   ;;  %s4175_s10 = inlined_call_operand.vmem [shape: f32[2,16,512], index: 10, kind: output, shape index: {}]  }
   0x1 LB: > { %s2730_s14 = sadd.s32 4294967295, %s3406_s13   ;;  %p2734_p0 = scmp.ge.s32.totalorder %s3406_s13, 1  ;;  %s3406_s13 = sphi %s3468_s13, %s20_s13  }
   0x2   : > { %p312_p1 = scmp.lt.s32.totalorder %s3406_s13, 3 }
   0x4   : > { %p313_p2 = pnand %p2734_p0, %p312_p1 }
   0x5   : > { %p350_p3 = scmp.lt.s32.totalorder (!%p313_p2), %s2730_s14, 1  ;;  %s3408_s19 = smov (!%p313_p2), 4   ;;  %vm387_vm0 = vcmask (!%p313_p2), 31744   ;;  %vm391_vm1 = vcmask (!%p313_p2), 556032   ;;  %vm401_vm2 = vcmask (!%p313_p2), 1040384   ;;  %v3410_v31 = vmov (!%p313_p2), 0  }
   0x6   : > { %316 = sbr.rel (%p313_p2) target bundleno = 1216 (0x4c0), region = 60  ;;  %vm402_vm3 = vsmask.f32 (!%p313_p2), 256  ;;  %s3409_s20 = smov (!%p313_p2), 124   ;;  %vm451_vm5 = vsmask.f32 (!%p313_p2), 7424  ;;  %627 = vmatprep.mubr.bf16.mxu0 (!%p313_p2), %v3410_v31  ;;  %670 = vmatprep.mubr.bf16.mxu1 (!%p313_p2), %v3410_v31 }
   0x7   : > { %vm3487_vm4 = vmand (!%p313_p2), %vm401_vm2, %vm402_vm3  ;;  %v3152_v21 = vld [vmem:[%s4171_s6 + $0x4] ss:$16 sps:$4 sm:$0xff] (!%p313_p2)   ;;  %v3154_v22 = vld [vmem:[%s4171_s6] ss:$16 sps:$4 sm:$0xff] (!%p313_p2)   ;;  %vm591_vm6 = vcmask (!%p313_p2), 523264   ;;  %vm3412_vm7 = vmmov (!%p313_p2), 0  }
   0x8   : > { %v3155_v23 = vld [vmem:[%s4171_s6 + $0xc] ss:$16 sps:$4 sm:$0xff] (!%p313_p2)   ;;  %v3157_v24 = vld [vmem:[%s4171_s6 + $0x8] ss:$16 sps:$4 sm:$0xff] (!%p313_p2)   ;;  %v3158_v25 = vld [vmem:[%s4171_s6 + $0x24] ss:$16 sps:$4 sm:$0xff] (!%p313_p2)   ;;  %595 = vmatprep.subr.bf16.mxu0 (!%p313_p2), %v3152_v21 }
   0x9   : > { %v3161_v26 = vld [vmem:[%s4171_s6 + $0x2c] ss:$16 sps:$4 sm:$0xff] (!%p313_p2)   ;;  %638 = vmatprep.subr.bf16.mxu1 (!%p313_p2), %v3155_v23  ;;  %596 = vmatpush1.bf16.msra.mxu0 (!%p313_p2), %v3154_v22  ;;  %v3160_v27 = vld [vmem:[%s4171_s6 + $0x20] ss:$16 sps:$4 sm:$0xff] (!%p313_p2)   ;;  %v3163_v28 = vld [vmem:[%s4171_s6 + $0x28] ss:$16 sps:$4 sm:$0xff] (!%p313_p2)  }
   0xa   : > { %639 = vmatpush1.bf16.msra.mxu1 (!%p313_p2), %v3157_v24  ;;  %597 = vmatprep.subr.bf16.mxu0 (!%p313_p2), %v3158_v25  ;;  %v3164_v29 = vld [vmem:[%s4171_s6 + $0x44] ss:$16 sps:$4 sm:$0xff] (!%p313_p2)   ;;  %v3167_v30 = vld [vmem:[%s4171_s6 + $0x4c] ss:$16 sps:$4 sm:$0xff] (!%p313_p2)   ;;  %v3166_v32 = vld [vmem:[%s4171_s6 + $0x40] ss:$16 sps:$4 sm:$0xff] (!%p313_p2)  }
   0xb   : > { %640 = vmatprep.subr.bf16.mxu1 (!%p313_p2), %v3161_v26  ;;  %v3169_v33 = vld [vmem:[%s4171_s6 + $0x48] ss:$16 sps:$4 sm:$0xff] (!%p313_p2)   ;;  %v3170_v34 = vld [vmem:[%s4171_s6 + $0x64] ss:$16 sps:$4 sm:$0xff] (!%p313_p2)   ;;  %v3173_v35 = vld [vmem:[%s4171_s6 + $0x6c] ss:$16 sps:$4 sm:$0xff] (!%p313_p2)  }
   0xc   : > { %v3172_v36 = vld [vmem:[%s4171_s6 + $0x60] ss:$16 sps:$4 sm:$0xff] (!%p313_p2)   ;;  %v3175_v37 = vld [vmem:[%s4171_s6 + $0x68] ss:$16 sps:$4 sm:$0xff] (!%p313_p2)   ;;  %v3178_v38 = vld [vmem:[%s4170_s5 + $0x4] ss:$16 sps:$4 sm:$0xff] (!%p313_p2)  }
   0xd   : > { %s4179_s14 = smov (!%p350_p3, %s2730_s14), 1  ;;  %598 = vmatpush1.bf16.msra.mxu0 %v3160_v27  ;;  %v3200_v21 = vld [vmem:[%s4170_s5 + $0x4c] ss:$16 sps:$4 sm:$0xff]   ;;  %v3182_v22 = vld [vmem:[%s4170_s5 + $0x40] ss:$16 sps:$4 sm:$0xff]   ;;  %vm1361_vm8 = vcmask 1046528  }
   0xe   : > { %s3030_s15 = sshll.u32 %s4179_s14, 3  ;;  %641 = vmatpush1.bf16.msra.mxu1 %v3163_v28  ;;  %599 = vmatprep.subr.bf16.mxu0 %v3164_v29  ;;  %v3187_v23 = vld [vmem:[%s4170_s5 + $0x64] ss:$16 sps:$4 sm:$0xff]   ;;  %v3198_v24 = vld [vmem:[%s4170_s5 + $0x48] ss:$16 sps:$4 sm:$0xff]   ;;  %vm2448_vm10 = vcmask 1045504  }
   0xf   : > { %s354_s18 = scalar_lea.vmem %s4165_s0, %s3030_s15  ;;  %642 = vmatprep.subr.bf16.mxu1 %v3167_v30  ;;  %v3203_v25 = vld [vmem:[%s4170_s5 + $0x6c] ss:$16 sps:$4 sm:$0xff]   ;;  %v3185_v26 = vld [vmem:[%s4170_s5 + $0x60] ss:$16 sps:$4 sm:$0xff]   ;;  %v3201_v27 = vld [vmem:[%s4170_s5 + $0x68] ss:$16 sps:$4 sm:$0xff]  }
  0x10   : > { %v3482_v0 = vld [vmem:[%s354_s18] sm:$0xff]   ;;  %v3209_v28 = vld [vmem:[%s4172_s7 + $0xc] ss:$16 sps:$4 sm:$0xff]   ;;  %v3411_v30 = vmov 0.0   ;;  %vm2244_vm9 = vsmask.f32 6400 }
  0x11   : > { %385 = vrot.lane.b32.xlu0 %v3482_v0, %s3408_s19  ;;  %600 = vmatpush1.bf16.msra.mxu0 %v3166_v32  ;;  %v3188_v29 = vld [vmem:[%s4166_s1] sm:$0xff]   ;;  %v3207_v32 = vld [vmem:[%s4172_s7 + $0x8] ss:$16 sps:$4 sm:$0xff]   ;;  %s3031_s23 = sshll.u32 %s4179_s14, 6 }
  0x12   : > { %643 = vmatpush1.bf16.msra.mxu1 %v3169_v33  ;;  %601 = vmatprep.subr.bf16.mxu0 %v3170_v34  ;;  %v3189_v33 = vld [vmem:[%s4166_s1 + $0x8] sm:$0xff]   ;;  %v3190_v34 = vld [vmem:[%s4166_s1 + $0x10] sm:$0xff]   ;;  %s359_s26 = scalar_lea.vmem %s4175_s10, %s3031_s23 }
  0x13   : > { %644 = vmatprep.subr.bf16.mxu1 %v3173_v35  ;;  %v3191_v35 = vld [vmem:[%s4166_s1 + $0x18] sm:$0xff]   ;;  %v3246_v8 = vld [vmem:[%s4172_s7 + $0xe0] ss:$16 sps:$4 sm:$0xff]  }
  0x15   : > { %602 = vmatpush1.bf16.msra.mxu0 %v3172_v36  ;;  %v3206_v36 = vld [vmem:[%s4172_s7 + $0x4] ss:$16 sps:$4 sm:$0xff]  }
  0x16   : > { %645 = vmatpush1.bf16.msra.mxu1 %v3175_v37  ;;  %764 = vmatprep.subr.bf16.mxu0 %v3178_v38  ;;  %v3204_v37 = vld [vmem:[%s4172_s7] ss:$16 sps:$4 sm:$0xff]   ;;  %v3212_v38 = vld [vmem:[%s4172_s7 + $0x24] ss:$16 sps:$4 sm:$0xff]  }
  0x83   : > { %v386_v1 = vpop.permute.xlu0 %385 }
  0x84   : > { %v390_v2 = vsel %vm387_vm0, 4286644096, %v386_v1 }
  0x85   : > { %v392_v3 = vsel %vm391_vm1, %v390_v2, 4286644096 }
  0x86   : > { %v393_v4 = vshrl.u32 %v392_v3, 16  ;;  %v396_v6 = vshll.u32 %v392_v3, 16 }
  0x88   : > { %v395_v5 = vrot.slane %v393_v4, 7 }
  0x8a   : > { %v398_v7 = vor.u32 %v396_v6, %v395_v5  ;;  %v3507_v13 = vsel %vm3487_vm4, %v395_v5, 4286644096 }
  0x8b   : > { %v455_v16 = vshll.u32 %v3507_v13, 16  ;;  %v3525_v20 = vshrl.u32 %v3507_v13, 16 }
  0x8c   : > { %v3493_v9 = vsel %vm3487_vm4, 4286644096, %v398_v7 }
  0x8d   : > { %435 = vrot.lane.b32.xlu1 %v3493_v9, %s3408_s19  ;;  %v407_v10 = vshrl.u32 %v3493_v9, 16  ;;  %v410_v12 = vshll.u32 %v3493_v9, 16  ;;  %v457_v18 = vrot.slane %v455_v16, 1 }
  0x8f   : > { %v3498_v11 = vrot.slane %v407_v10, 7  ;;  %v452_v15 = vrot.slane %v410_v12, 1 }
  0x91   : > { %427 = vrot.lane.b32.xlu0 %v3498_v11, %s3409_s20  ;;  %415 = vrot.lane.b32.xlu1 %v3498_v11, %s3408_s19  ;;  %v412_v14 = vor.u32 %v410_v12, %v3498_v11  ;;  %v453_v17 = vor.u32 %v452_v15, %v407_v10  ;;  %v3194_v12 = vld [vmem:[%s4170_s5 + $0xc] ss:$16 sps:$4 sm:$0xff]   ;;  %v3192_v15 = vld [vmem:[%s4170_s5 + $0x8] ss:$16 sps:$4 sm:$0xff]  }
  0x92   : > { %807 = vmatprep.subr.bf16.mxu1 %v3194_v12  ;;  %v3245_v12 = vld [vmem:[%s4172_s7 + $0xcc] ss:$16 sps:$4 sm:$0xff]  }
  0x93   : > { %v3518_v19 = vsel %vm451_vm5, %v453_v17, %v457_v18  ;;  %v3197_v17 = vld [vmem:[%s4170_s5 + $0x2c] ss:$16 sps:$4 sm:$0xff]   ;;  %v3179_v18 = vld [vmem:[%s4170_s5 + $0x20] ss:$16 sps:$4 sm:$0xff]  }
  0x95   : > { %425 = vrot.lane.b32.xlu1 %v412_v14, %s3409_s20  ;;  %413 = vrot.lane.b32.xlu0 %v412_v14, %s3408_s19 }
  0x99   : > { %443 = vrot.lane.b32.xlu1 %v3493_v9, %s3409_s20  ;;  %437 = vrot.lane.b32.xlu0 %v3507_v13, %s3408_s19 }
  0x9d   : > { %461 = vrot.lane.b32.xlu1 %v3518_v19, %s3408_s19  ;;  %445 = vrot.lane.b32.xlu0 %v3507_v13, %s3409_s20 }
  0xa1   : > { %473 = vrot.lane.b32.xlu1 %v3518_v19, %s3409_s20  ;;  %463 = vrot.lane.b32.xlu0 %v3525_v20, %s3408_s19 }
  0xa5   : > { %475 = vrot.lane.b32.xlu0 %v3525_v20, %s3409_s20 }
  0xff   : > { %v436_v39 = vpop.permute.xlu1 %435 }
 0x103   : > { %v428_v40 = vpop.permute.xlu0 %427  ;;  %v416_v41 = vpop.permute.xlu1 %415 }
 0x104   : > { %v420_v42 = vmax.bf16 %v416_v41, %v3507_v13  ;;  %v3176_v13 = vld [vmem:[%s4170_s5] ss:$16 sps:$4 sm:$0xff]   ;;  %v3213_v41 = vld [vmem:[%s4172_s7 + $0x28] ss:$16 sps:$4 sm:$0xff]  }
 0x106   : > { %v424_v46 = vmax.bf16 %v420_v42, %v3498_v11  ;;  %v3218_v42 = vld [vmem:[%s4172_s7 + $0x44] ss:$16 sps:$4 sm:$0xff]  }
 0x107   : > { %v426_v43 = vpop.permute.xlu1 %425  ;;  %v414_v44 = vpop.permute.xlu0 %413 }
 0x108   : > { %v419_v45 = vmax.bf16 %v414_v44, %v3493_v9  ;;  %v432_v52 = vmax.bf16 %v428_v40, %v424_v46  ;;  %v3210_v40 = vld [vmem:[%s4172_s7 + $0x20] ss:$16 sps:$4 sm:$0xff]   ;;  %v3224_v46 = vld [vmem:[%s4172_s7 + $0x64] ss:$16 sps:$4 sm:$0xff]  }
 0x109   : > { %v3216_v44 = vld [vmem:[%s4172_s7 + $0x40] ss:$16 sps:$4 sm:$0xff]  }
 0x10a   : > { %v423_v47 = vmax.bf16 %v419_v45, %v412_v14  ;;  %v3181_v14 = vld [vmem:[%s4170_s5 + $0x24] ss:$16 sps:$4 sm:$0xff]   ;;  %v3219_v45 = vld [vmem:[%s4172_s7 + $0x48] ss:$16 sps:$4 sm:$0xff]  }
 0x10b   : > { %v444_v48 = vpop.permute.xlu1 %443  ;;  %v438_v49 = vpop.permute.xlu0 %437 }
 0x10c   : > { %v431_v50 = vmax.bf16 %v426_v43, %v423_v47  ;;  %v442_v56 = vmax.bf16 %v438_v49, %v432_v52  ;;  %v3221_v43 = vld [vmem:[%s4172_s7 + $0x4c] ss:$16 sps:$4 sm:$0xff]   ;;  %v3225_v49 = vld [vmem:[%s4172_s7 + $0x68] ss:$16 sps:$4 sm:$0xff]   ;;  %v2776_v52 = vld [vmem:[%s4167_s2] ss:$0 sm:$0xff] }
 0x10d   : > { %v3227_v47 = vld [vmem:[%s4172_s7 + $0x6c] ss:$16 sps:$4 sm:$0xff]  }
 0x10e   : > { %v441_v51 = vmax.bf16 %v436_v39, %v431_v50  ;;  %v3215_v39 = vld [vmem:[%s4172_s7 + $0x2c] ss:$16 sps:$4 sm:$0xff]   ;;  %v3230_v50 = vld [vmem:[%s4172_s7 + $0x84] ss:$16 sps:$4 sm:$0xff]  }
 0x10f   : > { %v462_v53 = vpop.permute.xlu1 %461  ;;  %v446_v54 = vpop.permute.xlu0 %445 }
 0x110   : > { %v449_v55 = vmax.bf16 %v444_v48, %v441_v51  ;;  %v450_v58 = vmax.bf16 %v446_v54, %v442_v56  ;;  %v3222_v48 = vld [vmem:[%s4172_s7 + $0x60] ss:$16 sps:$4 sm:$0xff]   ;;  %v3233_v51 = vld [vmem:[%s4172_s7 + $0x8c] ss:$16 sps:$4 sm:$0xff]  }
 0x112   : > { %v467_v57 = vmax.bf16 %v462_v53, %v449_v55 }
 0x113   : > { %v464_v59 = vpop.permute.xlu0 %463  ;;  %v474_v62 = vpop.permute.xlu1 %473 }
 0x114   : > { %v471_v60 = vmax.bf16 %v467_v57, %v3518_v19  ;;  %v468_v61 = vmax.bf16 %v464_v59, %v450_v58  ;;  %v3184_v19 = vld [vmem:[%s4170_s5 + $0x44] ss:$16 sps:$4 sm:$0xff]  }
 0x116   : > { %v479_v63 = vmax.bf16 %v474_v62, %v471_v60  ;;  %v472_v1 = vmax.bf16 %v468_v61, %v3525_v20  ;;  %v3195_v20 = vld [vmem:[%s4170_s5 + $0x28] ss:$16 sps:$4 sm:$0xff]  }
 0x117   : > { %v476_v2 = vpop.permute.xlu0 %475 }
 0x118   : > { %v500_v3 = vshll.u32 %v479_v63, 16  ;;  %v480_v4 = vmax.bf16 %v476_v2, %v472_v1  ;;  %v498_v5 = vshrl.u32 %v479_v63, 16 }
 0x11a   : > { %v502_v6 = vrot.slane %v500_v3, 1  ;;  %v505_v7 = vshll.u32 %v480_v4, 16  ;;  %v3228_v3 = vld [vmem:[%s4172_s7 + $0x80] ss:$16 sps:$4 sm:$0xff]   ;;  %v3231_v4 = vld [vmem:[%s4172_s7 + $0x88] ss:$16 sps:$4 sm:$0xff]  }
 0x11c   : > { %v503_v9 = vor.u32 %v502_v6, %v498_v5  ;;  %v507_v10 = vrot.slane %v505_v7, 1  ;;  %v3236_v5 = vld [vmem:[%s4172_s7 + $0xa4] ss:$16 sps:$4 sm:$0xff]   ;;  %v3239_v6 = vld [vmem:[%s4172_s7 + $0xac] ss:$16 sps:$4 sm:$0xff]  }
 0x11e   : > { %v508_v11 = vsel %vm451_vm5, %v503_v9, %v507_v10  ;;  %v3234_v9 = vld [vmem:[%s4172_s7 + $0xa0] ss:$16 sps:$4 sm:$0xff]   ;;  %v3237_v10 = vld [vmem:[%s4172_s7 + $0xa8] ss:$16 sps:$4 sm:$0xff]  }
 0x11f   : > { %509 = vrot.lane.b32.xlu1 %v508_v11, %s3409_s20  ;;  %v3242_v11 = vld [vmem:[%s4172_s7 + $0xc4] ss:$16 sps:$4 sm:$0xff]  }
 0x191   : > { %v510_v16 = vpop.permute.xlu1 %509 }
 0x192   : > { %2756 = vmatmul.mubr.msk.bf16.vlgmr.msra.gmra.mrb[0].mxu0 %vm591_vm6, %v510_v16  ;;  %2757 = vmatmul.mubr.msk.bf16.vlgmr.msra.gmra.mrb[0].mxu1 %vm591_vm6, %v510_v16 }
 0x193   : > { %765 = vmatpush1.bf16.msra.mxu0 %v3176_v13  ;;  %796 = vmatprep.mubr.bf16.mxu0 %v3410_v31 }
 0x194   : > { %766 = vmatprep.subr.bf16.mxu0 %v3181_v14  ;;  %808 = vmatpush1.bf16.msra.mxu1 %v3192_v15  ;;  %v3240_v14 = vld [vmem:[%s4172_s7 + $0xc0] ss:$16 sps:$4 sm:$0xff]   ;;  %v3243_v15 = vld [vmem:[%s4172_s7 + $0xc8] ss:$16 sps:$4 sm:$0xff]  }
 0x195   : > { %809 = vmatprep.subr.bf16.mxu1 %v3197_v17  ;;  %839 = vmatprep.mubr.bf16.mxu1 %v3410_v31  ;;  %v3248_v17 = vld [vmem:[%s4172_s7 + $0xe4] ss:$16 sps:$4 sm:$0xff]  }
 0x197   : > { %767 = vmatpush1.bf16.msra.mxu0 %v3179_v18  ;;  %v3251_v18 = vld [vmem:[%s4172_s7 + $0xec] ss:$16 sps:$4 sm:$0xff]  }
 0x198   : > { %768 = vmatprep.subr.bf16.mxu0 %v3184_v19  ;;  %810 = vmatpush1.bf16.msra.mxu1 %v3195_v20 }
 0x199   : > { %811 = vmatprep.subr.bf16.mxu1 %v3200_v21 }
 0x19b   : > { %769 = vmatpush1.bf16.msra.mxu0 %v3182_v22  ;;  %v3249_v22 = vld [vmem:[%s4172_s7 + $0xe8] ss:$16 sps:$4 sm:$0xff]  }
 0x19c   : > { %770 = vmatprep.subr.bf16.mxu0 %v3187_v23  ;;  %812 = vmatpush1.bf16.msra.mxu1 %v3198_v24  ;;  %v3254_v23 = vld [vmem:[%s4172_s7 + $0x104] ss:$16 sps:$4 sm:$0xff]   ;;  %v3257_v24 = vld [vmem:[%s4172_s7 + $0x10c] ss:$16 sps:$4 sm:$0xff]  }
 0x19d   : > { %813 = vmatprep.subr.bf16.mxu1 %v3203_v25 }
 0x19f   : > { %771 = vmatpush1.bf16.msra.mxu0 %v3185_v26 }
 0x1a0   : > { %3042 = vmatprep.subr.bf16.mxu0 %v3411_v30  ;;  %814 = vmatpush1.bf16.msra.mxu1 %v3201_v27  ;;  %v3252_v27 = vld [vmem:[%s4172_s7 + $0x100] ss:$16 sps:$4 sm:$0xff]  }
 0x1a1   : > { %1086 = vmatprep.subr.bf16.mxu1 %v3209_v28  ;;  %v3255_v28 = vld [vmem:[%s4172_s7 + $0x108] ss:$16 sps:$4 sm:$0xff]  }
 0x1a2   : > { %2774 = vmatmul.mubr.msk.bf16.vlgmr.msra.gmra.mrb[0].mxu0 %vm591_vm6, %v3482_v0 }
 0x1a3   : > { %3043 = vmatpush3.bf16.msra.mxu0 %v3188_v29  ;;  %3050 = vmatprep.mubr.msk.bf16.mxu0 %vm3412_vm7, %v3411_v30  ;;  %v3260_v29 = vld [vmem:[%s4172_s7 + $0x124] ss:$16 sps:$4 sm:$0xff]  }
 0x1a4   : > { %3044 = vmatprep.subr.bf16.mxu0 %v3411_v30  ;;  %2775 = vmatmul.mubr.msk.bf16.vlgmr.msra.gmra.mrb[0].mxu1 %vm591_vm6, %v3482_v0 }
 0x1a5   : > { %1087 = vmatpush1.bf16.msra.mxu1 %v3207_v32  ;;  %1118 = vmatprep.mubr.bf16.mxu1 %v3410_v31  ;;  %v3263_v32 = vld [vmem:[%s4172_s7 + $0x12c] ss:$16 sps:$4 sm:$0xff]  }
 0x1a6   : > { %1088 = vmatprep.subr.bf16.mxu1 %v3215_v39  ;;  %v3267_v39 = vld [vmem:[%s4172_s7 + $0x148] ss:$16 sps:$4 sm:$0xff]  }
 0x1a7   : > { %3045 = vmatpush3.bf16.msra.mxu0 %v3189_v33 }
 0x1a8   : > { %3046 = vmatprep.subr.bf16.mxu0 %v3411_v30 }
 0x1a9   : > { %1089 = vmatpush1.bf16.msra.mxu1 %v3213_v41  ;;  %v3275_v41 = vld [vmem:[%s4172_s7 + $0x16c] ss:$16 sps:$4 sm:$0xff]  }
 0x1aa   : > { %1090 = vmatprep.subr.bf16.mxu1 %v3221_v43  ;;  %v3273_v43 = vld [vmem:[%s4172_s7 + $0x168] ss:$16 sps:$4 sm:$0xff]  }
 0x1ab   : > { %3047 = vmatpush3.bf16.msra.mxu0 %v3190_v34  ;;  %v3258_v34 = vld [vmem:[%s4172_s7 + $0x120] ss:$16 sps:$4 sm:$0xff]  }
 0x1ac   : > { %3048 = vmatprep.subr.bf16.mxu0 %v3411_v30 }
 0x1ad   : > { %1091 = vmatpush1.bf16.msra.mxu1 %v3219_v45 }
 0x1ae   : > { %1092 = vmatprep.subr.bf16.mxu1 %v3227_v47  ;;  %v3276_v47 = vld [vmem:[%s4168_s3] sm:$0xff]  }
 0x1af   : > { %3049 = vmatpush3.bf16.msra.mxu0 %v3191_v35  ;;  %v3261_v35 = vld [vmem:[%s4172_s7 + $0x128] ss:$16 sps:$4 sm:$0xff]  }
 0x1b0   : > { %1043 = vmatprep.subr.bf16.mxu0 %v3206_v36  ;;  %v3266_v36 = vld [vmem:[%s4172_s7 + $0x144] ss:$16 sps:$4 sm:$0xff]  }
 0x1b1   : > { %1093 = vmatpush1.bf16.msra.mxu1 %v3225_v49 }
 0x1b2   : > { %3051 = vmatmul.mubr.msk.bf16.vlgmr.msra.gmra.mrb[4].mxu0 %vm591_vm6, %v3482_v0  ;;  %1291 = vmatprep.subr.bf16.mxu1 %v3233_v51  ;;  %v3277_v51 = vld [vmem:[%s4168_s3 + $0x8] sm:$0xff]  }
 0x1b3   : > { %1044 = vmatpush1.bf16.msra.mxu0 %v3204_v37  ;;  %1075 = vmatprep.mubr.bf16.mxu0 %v3410_v31  ;;  %v3269_v37 = vld [vmem:[%s4172_s7 + $0x14c] ss:$16 sps:$4 sm:$0xff]  }
 0x1b4   : > { %1045 = vmatprep.subr.bf16.mxu0 %v3212_v38  ;;  %v3264_v38 = vld [vmem:[%s4172_s7 + $0x140] ss:$16 sps:$4 sm:$0xff]  }
 0x1b7   : > { %1046 = vmatpush1.bf16.msra.mxu0 %v3210_v40  ;;  %v3272_v40 = vld [vmem:[%s4172_s7 + $0x164] ss:$16 sps:$4 sm:$0xff]  }
 0x1b8   : > { %1047 = vmatprep.subr.bf16.mxu0 %v3218_v42  ;;  %v3270_v42 = vld [vmem:[%s4172_s7 + $0x160] ss:$16 sps:$4 sm:$0xff]  }
 0x1bb   : > { %1048 = vmatpush1.bf16.msra.mxu0 %v3216_v44  ;;  %v3282_v44 = vld [vmem:[%s4173_s8 + $0x4] ss:$16 sps:$4 sm:$0xff]  }
 0x1bc   : > { %1049 = vmatprep.subr.bf16.mxu0 %v3224_v46 }
 0x1bf   : > { %1050 = vmatpush1.bf16.msra.mxu0 %v3222_v48  ;;  %v3280_v48 = vld [vmem:[%s4173_s8] ss:$16 sps:$4 sm:$0xff]  }
 0x1c0   : > { %1248 = vmatprep.subr.bf16.mxu0 %v3230_v50  ;;  %v3288_v50 = vld [vmem:[%s4173_s8 + $0x24] ss:$16 sps:$4 sm:$0xff]  }
 0x285   : > { %v923_v53 = vpop.f32.mrb[4].mxu0 }
 0x286   : > { %v924_v54 = vadd.f32 %v2776_v52, %v923_v53  ;;  %v3052_v55 = vpop.f32.mrb[5].mxu0  ;;  %v3278_v53 = vld [vmem:[%s4168_s3 + $0x10] sm:$0xff]  }
 0x287   : > { %v926_v56 = vpop.f32.mrb[6].mxu0  ;;  %v3285_v55 = vld [vmem:[%s4173_s8 + $0xc] ss:$16 sps:$4 sm:$0xff]  }
 0x288   : > { %v927_v57 = vadd.f32 %v2776_v52, %v926_v56  ;;  %v3053_v58 = vpop.f32.mrb[7].mxu0  ;;  %v930_v59 = vmax.f32 %v924_v54, 0.0  ;;  %v3286_v52 = vld [vmem:[%s4173_s8 + $0x20] ss:$16 sps:$4 sm:$0xff]   ;;  %v3279_v54 = vld [vmem:[%s4168_s3 + $0x18] sm:$0xff]  }
 0x289   : > { %v3283_v56 = vld [vmem:[%s4173_s8 + $0x8] ss:$16 sps:$4 sm:$0xff]   ;;  %v3294_v58 = vld [vmem:[%s4173_s8 + $0x44] ss:$16 sps:$4 sm:$0xff]  }
 0x28a   : > { %v931_v60 = vmax.f32 %v927_v57, 0.0  ;;  %v3291_v57 = vld [vmem:[%s4173_s8 + $0x2c] ss:$16 sps:$4 sm:$0xff]  }
 0x28c   : > { %v932_v61 = vpack.c.bf16 %v931_v60, %v930_v59  ;;  %v3297_v59 = vld [vmem:[%s4173_s8 + $0x4c] ss:$16 sps:$4 sm:$0xff]   ;;  %v3295_v60 = vld [vmem:[%s4173_s8 + $0x48] ss:$16 sps:$4 sm:$0xff]  }
 0x28e   : > { %v934_v62 = vshrl.u32 %v932_v61, 16  ;;  %v937_v1 = vshll.u32 %v932_v61, 16  ;;  %v3300_v61 = vld [vmem:[%s4173_s8 + $0x64] ss:$16 sps:$4 sm:$0xff]  }
 0x290   : > { %v936_v63 = vrot.slane %v934_v62, 7  ;;  %v3303_v62 = vld [vmem:[%s4173_s8 + $0x6c] ss:$16 sps:$4 sm:$0xff]  }
 0x292   : > { %v939_v2 = vor.u32 %v937_v1, %v936_v63  ;;  %v3768_v16 = vsel %vm3487_vm4, %v936_v63, 0  ;;  %v3298_v63 = vld [vmem:[%s4173_s8 + $0x60] ss:$16 sps:$4 sm:$0xff]   ;;  %v3301_v1 = vld [vmem:[%s4173_s8 + $0x68] ss:$16 sps:$4 sm:$0xff]  }
 0x293   : > { %v1161_v20 = vshll.u32 %v3768_v16, 16  ;;  %v1363_v46 = vrot.slane %v3768_v16, 1  ;;  %v3304_v16 = vld [vmem:[%s4173_s8 + $0x80] ss:$16 sps:$4 sm:$0xff]  }
 0x294   : > { %v3739_v7 = vsel %vm3487_vm4, 0, %v939_v2  ;;  %v3306_v2 = vld [vmem:[%s4173_s8 + $0x84] ss:$16 sps:$4 sm:$0xff]  }
 0x295   : > { %2798 = vmatmul.mubr.msk.bf16.vlgmr.msra.gmra.mrb[0].mxu0 %vm591_vm6, %v3739_v7  ;;  %2799 = vmatmul.mubr.msk.bf16.vlgmr.msra.gmra.mrb[0].mxu1 %vm591_vm6, %v3739_v7  ;;  %v1156_v13 = vshll.u32 %v3739_v7, 16  ;;  %v1154_v21 = vshrl.u32 %v3739_v7, 16  ;;  %v1163_v26 = vrot.slane %v1161_v20, 1  ;;  %v1362_v45 = vrot.slane %v3739_v7, 1 }
 0x296   : > { %1249 = vmatpush1.bf16.msra.mxu0 %v3228_v3  ;;  %1292 = vmatpush1.bf16.msra.mxu1 %v3231_v4  ;;  %v3309_v3 = vld [vmem:[%s4173_s8 + $0x8c] ss:$16 sps:$4 sm:$0xff]   ;;  %v2868_v4 = vld [vmem:[%s4169_s4] ss:$0 sm:$0xff] }
 0x297   : > { %1250 = vmatprep.subr.bf16.mxu0 %v3236_v5  ;;  %1293 = vmatprep.subr.bf16.mxu1 %v3239_v6  ;;  %v1158_v19 = vrot.slane %v1156_v13, 1  ;;  %v1364_v49 = vsel %vm1361_vm8, %v1362_v45, %v1363_v46  ;;  %v3334_v46 = vld [vmem:[%s4173_s8 + $0x120] ss:$16 sps:$4 sm:$0xff]  }
 0x298   : > { %1280 = vmatprep.mubr.bf16.mxu0 %v3410_v31  ;;  %1323 = vmatprep.mubr.bf16.mxu1 %v3410_v31 }
 0x299   : > { %v1159_v25 = vor.u32 %v1158_v19, %v1154_v21  ;;  %v3315_v19 = vld [vmem:[%s4173_s8 + $0xac] ss:$16 sps:$4 sm:$0xff]   ;;  %v3310_v21 = vld [vmem:[%s4173_s8 + $0xa0] ss:$16 sps:$4 sm:$0xff]  }
 0x29a   : > { %1251 = vmatpush1.bf16.msra.mxu0 %v3234_v9  ;;  %1294 = vmatpush1.bf16.msra.mxu1 %v3237_v10 }
 0x29b   : > { %1252 = vmatprep.subr.bf16.mxu0 %v3242_v11  ;;  %1295 = vmatprep.subr.bf16.mxu1 %v3245_v12  ;;  %v1164_v33 = vsel %vm451_vm5, %v1159_v25, %v1163_v26  ;;  %v3316_v25 = vld [vmem:[%s4173_s8 + $0xc0] ss:$16 sps:$4 sm:$0xff]   ;;  %v3319_v26 = vld [vmem:[%s4173_s8 + $0xc8] ss:$16 sps:$4 sm:$0xff]  }
 0x29e   : > { %1253 = vmatpush1.bf16.msra.mxu0 %v3240_v14  ;;  %1296 = vmatpush1.bf16.msra.mxu1 %v3243_v15 }
 0x29f   : > { %1254 = vmatprep.subr.bf16.mxu0 %v3248_v17  ;;  %1297 = vmatprep.subr.bf16.mxu1 %v3251_v18  ;;  %v3307_v17 = vld [vmem:[%s4173_s8 + $0x88] ss:$16 sps:$4 sm:$0xff]   ;;  %v3312_v18 = vld [vmem:[%s4173_s8 + $0xa4] ss:$16 sps:$4 sm:$0xff]  }
 0x2a2   : > { %1255 = vmatpush1.bf16.msra.mxu0 %v3246_v8  ;;  %1298 = vmatpush1.bf16.msra.mxu1 %v3249_v22  ;;  %v3313_v8 = vld [vmem:[%s4173_s8 + $0xa8] ss:$16 sps:$4 sm:$0xff]   ;;  %v3318_v22 = vld [vmem:[%s4173_s8 + $0xc4] ss:$16 sps:$4 sm:$0xff]  }
 0x2a3   : > { %1448 = vmatprep.subr.bf16.mxu0 %v3254_v23  ;;  %1491 = vmatprep.subr.bf16.mxu1 %v3257_v24  ;;  %v3321_v23 = vld [vmem:[%s4173_s8 + $0xcc] ss:$16 sps:$4 sm:$0xff]  }
 0x2a5   : > { %2832 = vmatmul.mubr.msk.bf16.vlgmr.msra.gmra.mrb[0].mxu0 %vm591_vm6, %v1164_v33  ;;  %2833 = vmatmul.mubr.msk.bf16.vlgmr.msra.gmra.mrb[0].mxu1 %vm591_vm6, %v1164_v33 }
 0x2a6   : > { %1449 = vmatpush1.bf16.msra.mxu0 %v3252_v27  ;;  %1492 = vmatpush1.bf16.msra.mxu1 %v3255_v28  ;;  %v3324_v28 = vld [vmem:[%s4173_s8 + $0xe4] ss:$16 sps:$4 sm:$0xff]  }
 0x2a7   : > { %1450 = vmatprep.subr.bf16.mxu0 %v3260_v29  ;;  %1493 = vmatprep.subr.bf16.mxu1 %v3263_v32  ;;  %v3327_v29 = vld [vmem:[%s4173_s8 + $0xec] ss:$16 sps:$4 sm:$0xff]  }
 0x2a8   : > { %1480 = vmatprep.mubr.bf16.mxu0 %v3410_v31  ;;  %1523 = vmatprep.mubr.bf16.mxu1 %v3410_v31 }
 0x2aa   : > { %1451 = vmatpush1.bf16.msra.mxu0 %v3258_v34  ;;  %1494 = vmatpush1.bf16.msra.mxu1 %v3261_v35  ;;  %v3322_v34 = vld [vmem:[%s4173_s8 + $0xe0] ss:$16 sps:$4 sm:$0xff]   ;;  %v3325_v35 = vld [vmem:[%s4173_s8 + $0xe8] ss:$16 sps:$4 sm:$0xff]  }
 0x2ab   : > { %1452 = vmatprep.subr.bf16.mxu0 %v3266_v36  ;;  %1495 = vmatprep.subr.bf16.mxu1 %v3269_v37  ;;  %v3330_v37 = vld [vmem:[%s4173_s8 + $0x104] ss:$16 sps:$4 sm:$0xff]  }
 0x2ae   : > { %1453 = vmatpush1.bf16.msra.mxu0 %v3264_v38  ;;  %1496 = vmatpush1.bf16.msra.mxu1 %v3267_v39  ;;  %v3333_v38 = vld [vmem:[%s4173_s8 + $0x10c] ss:$16 sps:$4 sm:$0xff]  }
 0x2af   : > { %1454 = vmatprep.subr.bf16.mxu0 %v3272_v40  ;;  %1497 = vmatprep.subr.bf16.mxu1 %v3275_v41  ;;  %v3328_v41 = vld [vmem:[%s4173_s8 + $0x100] ss:$16 sps:$4 sm:$0xff]  }
 0x2b2   : > { %1455 = vmatpush1.bf16.msra.mxu0 %v3270_v42  ;;  %1498 = vmatpush1.bf16.msra.mxu1 %v3273_v43  ;;  %v3331_v42 = vld [vmem:[%s4173_s8 + $0x108] ss:$16 sps:$4 sm:$0xff]   ;;  %v3336_v43 = vld [vmem:[%s4173_s8 + $0x124] ss:$16 sps:$4 sm:$0xff]  }
 0x2b3   : > { %3054 = vmatprep.subr.bf16.mxu1 %v3411_v30  ;;  %1730 = vmatprep.subr.bf16.mxu0 %v3282_v44  ;;  %v3339_v44 = vld [vmem:[%s4173_s8 + $0x12c] ss:$16 sps:$4 sm:$0xff]  }
 0x2b5   : > { %2866 = vmatmul.mubr.msk.bf16.vlgmr.msra.gmra.mrb[0].mxu0 %vm591_vm6, %v1364_v49  ;;  %2867 = vmatmul.mubr.msk.bf16.vlgmr.msra.gmra.mrb[0].mxu1 %vm591_vm6, %v1364_v49  ;;  %v3345_v49 = vld [vmem:[%s4173_s8 + $0x14c] ss:$16 sps:$4 sm:$0xff]  }
 0x2b6   : > { %3055 = vmatpush3.bf16.msra.mxu1 %v3276_v47  ;;  %3062 = vmatprep.mubr.msk.bf16.mxu1 %vm3412_vm7, %v3411_v30  ;;  %v3337_v47 = vld [vmem:[%s4173_s8 + $0x128] ss:$16 sps:$4 sm:$0xff]  }
 0x2b7   : > { %3056 = vmatprep.subr.bf16.mxu1 %v3411_v30  ;;  %1731 = vmatpush1.bf16.msra.mxu0 %v3280_v48  ;;  %v3342_v48 = vld [vmem:[%s4173_s8 + $0x144] ss:$16 sps:$4 sm:$0xff]  }
 0x2b8   : > { %1732 = vmatprep.subr.bf16.mxu0 %v3288_v50  ;;  %1762 = vmatprep.mubr.bf16.mxu0 %v3410_v31  ;;  %v3340_v50 = vld [vmem:[%s4173_s8 + $0x140] ss:$16 sps:$4 sm:$0xff]  }
 0x2ba   : > { %3057 = vmatpush3.bf16.msra.mxu1 %v3277_v51  ;;  %v3343_v51 = vld [vmem:[%s4173_s8 + $0x148] ss:$16 sps:$4 sm:$0xff]  }
 0x2bb   : > { %3058 = vmatprep.subr.bf16.mxu1 %v3411_v30  ;;  %1733 = vmatpush1.bf16.msra.mxu0 %v3286_v52  ;;  %v3348_v52 = vld [vmem:[%s4173_s8 + $0x164] ss:$16 sps:$4 sm:$0xff]  }
 0x2bc   : > { %1734 = vmatprep.subr.bf16.mxu0 %v3294_v58 }
 0x2be   : > { %3059 = vmatpush3.bf16.msra.mxu1 %v3278_v53  ;;  %v3351_v53 = vld [vmem:[%s4173_s8 + $0x16c] ss:$16 sps:$4 sm:$0xff]  }
 0x2bf   : > { %3060 = vmatprep.subr.bf16.mxu1 %v3411_v30  ;;  %v3289_v30 = vld [vmem:[%s4173_s8 + $0x28] ss:$16 sps:$4 sm:$0xff]  }
 0x2c2   : > { %3061 = vmatpush3.bf16.msra.mxu1 %v3279_v54  ;;  %v3346_v54 = vld [vmem:[%s4173_s8 + $0x160] ss:$16 sps:$4 sm:$0xff]  }
 0x2c3   : > { %1773 = vmatprep.subr.bf16.mxu1 %v3285_v55  ;;  %v3349_v55 = vld [vmem:[%s4173_s8 + $0x168] ss:$16 sps:$4 sm:$0xff]  }
 0x2c5   : > { %3063 = vmatmul.mubr.msk.bf16.vlgmr.msra.gmra.mrb[4].mxu1 %vm591_vm6, %v3482_v0  ;;  %v3292_v0 = vld [vmem:[%s4173_s8 + $0x40] ss:$16 sps:$4 sm:$0xff]  }
 0x2c6   : > { %1774 = vmatpush1.bf16.msra.mxu1 %v3283_v56  ;;  %1805 = vmatprep.mubr.bf16.mxu1 %v3410_v31  ;;  %v3354_v56 = vld [vmem:[%s4173_s8 + $0x184] ss:$16 sps:$4 sm:$0xff]  }
 0x2c7   : > { %1775 = vmatprep.subr.bf16.mxu1 %v3291_v57  ;;  %1735 = vmatpush1.bf16.msra.mxu0 %v3292_v0  ;;  %v3357_v57 = vld [vmem:[%s4173_s8 + $0x18c] ss:$16 sps:$4 sm:$0xff]   ;;  %v3355_v0 = vld [vmem:[%s4173_s8 + $0x188] ss:$16 sps:$4 sm:$0xff]  }
 0x2c8   : > { %1736 = vmatprep.subr.bf16.mxu0 %v3300_v61  ;;  %v3363_v61 = vld [vmem:[%s4173_s8 + $0x1ac] ss:$16 sps:$4 sm:$0xff]  }
 0x2ca   : > { %1776 = vmatpush1.bf16.msra.mxu1 %v3289_v30 }
 0x2cb   : > { %1777 = vmatprep.subr.bf16.mxu1 %v3297_v59  ;;  %1737 = vmatpush1.bf16.msra.mxu0 %v3298_v63  ;;  %v3352_v59 = vld [vmem:[%s4173_s8 + $0x180] ss:$16 sps:$4 sm:$0xff]  }
 0x2cc   : > { %1934 = vmatprep.subr.bf16.mxu0 %v3306_v2  ;;  %v3358_v63 = vld [vmem:[%s4173_s8 + $0x1a0] ss:$16 sps:$4 sm:$0xff]   ;;  %v3366_v2 = vld [vmem:[%s4173_s8 + $0x1c4] ss:$16 sps:$4 sm:$0xff]  }
 0x2ce   : > { %1778 = vmatpush1.bf16.msra.mxu1 %v3295_v60  ;;  %v3360_v60 = vld [vmem:[%s4173_s8 + $0x1a4] ss:$16 sps:$4 sm:$0xff]  }
 0x2cf   : > { %1779 = vmatprep.subr.bf16.mxu1 %v3303_v62 }
 0x2d2   : > { %1780 = vmatpush1.bf16.msra.mxu1 %v3301_v1  ;;  %v3361_v1 = vld [vmem:[%s4173_s8 + $0x1a8] ss:$16 sps:$4 sm:$0xff]  }
 0x2d3   : > { %1977 = vmatprep.subr.bf16.mxu1 %v3309_v3  ;;  %v3369_v3 = vld [vmem:[%s4173_s8 + $0x1cc] ss:$16 sps:$4 sm:$0xff]  }
 0x398   : > { %v1615_v5 = vpop.f32.mrb[4].mxu1 }
 0x399   : > { %v1616_v6 = vadd.f32 %v2868_v4, %v1615_v5  ;;  %v3064_v7 = vpop.f32.mrb[5].mxu1  ;;  %v3364_v5 = vld [vmem:[%s4173_s8 + $0x1c0] ss:$16 sps:$4 sm:$0xff]  }
 0x39a   : > { %v1618_v9 = vpop.f32.mrb[6].mxu1  ;;  %v3372_v7 = vld [vmem:[%s4173_s8 + $0x1e4] ss:$16 sps:$4 sm:$0xff]  }
 0x39b   : > { %v1619_v10 = vadd.f32 %v2868_v4, %v1618_v9  ;;  %v3065_v11 = vpop.f32.mrb[7].mxu1  ;;  %v1622_v12 = vmax.f32 %v1616_v6, 0.0  ;;  %v3367_v6 = vld [vmem:[%s4173_s8 + $0x1c8] ss:$16 sps:$4 sm:$0xff]   ;;  %v3375_v9 = vld [vmem:[%s4173_s8 + $0x1ec] ss:$16 sps:$4 sm:$0xff]  }
 0x39d   : > { %v1623_v13 = vmax.f32 %v1619_v10, 0.0 }
 0x39f   : > { %v1624_v14 = vpack.c.bf16 %v1623_v13, %v1622_v12 }
 0x3a1   : > { %v1626_v15 = vrot.slane %v1624_v14, 7  ;;  %v3370_v14 = vld [vmem:[%s4173_s8 + $0x1e0] ss:$16 sps:$4 sm:$0xff]  }
 0x3a3   : > { %v3934_v20 = vsel %vm401_vm2, 0, %v1626_v15  ;;  %v3962_v27 = vsel %vm401_vm2, %v1626_v15, 0  ;;  %v3373_v15 = vld [vmem:[%s4173_s8 + $0x1e8] ss:$16 sps:$4 sm:$0xff]  }
 0x3a4   : > { %2890 = vmatmul.mubr.msk.bf16.vlgmr.msra.gmra.mrb[0].mxu0 %vm591_vm6, %v3934_v20  ;;  %2891 = vmatmul.mubr.msk.bf16.vlgmr.msra.gmra.mrb[0].mxu1 %vm591_vm6, %v3934_v20  ;;  %v1843_v24 = vshll.u32 %v3934_v20, 16  ;;  %v1847_v33 = vshll.u32 %v3962_v27, 16  ;;  %v1841_v36 = vshrl.u32 %v3934_v20, 16  ;;  %v2048_v30 = vrot.slane %v3962_v27, 1 }
 0x3a5   : > { %1935 = vmatpush1.bf16.msra.mxu0 %v3304_v16  ;;  %1978 = vmatpush1.bf16.msra.mxu1 %v3307_v17  ;;  %v2047_v58 = vrot.slane %v3934_v20, 1  ;;  %v2248_v4 = vshrl.u32 %v3962_v27, 16  ;;  %v3378_v16 = vld [vmem:[%s4173_s8 + $0x204] ss:$16 sps:$4 sm:$0xff]   ;;  %v3381_v17 = vld [vmem:[%s4173_s8 + $0x20c] ss:$16 sps:$4 sm:$0xff]  }
 0x3a6   : > { %1936 = vmatprep.subr.bf16.mxu0 %v3312_v18  ;;  %1979 = vmatprep.subr.bf16.mxu1 %v3315_v19  ;;  %v1845_v32 = vrot.slane %v1843_v24, 1  ;;  %v1849_v40 = vrot.slane %v1847_v33, 1  ;;  %v2251_v11 = vrot.slane %v1847_v33, 2  ;;  %v2245_v12 = vrot.slane %v1841_v36, 1  ;;  %v3391_v33 = vld [vmem:[%s4173_s8 + $0x248] ss:$16 sps:$4 sm:$0xff]  }
 0x3a7   : > { %1966 = vmatprep.mubr.bf16.mxu0 %v3410_v31  ;;  %2009 = vmatprep.mubr.bf16.mxu1 %v3410_v31  ;;  %v2049_v62 = vsel %vm1361_vm8, %v2047_v58, %v2048_v30  ;;  %v2250_v10 = vrot.slane %v2248_v4, 1  ;;  %v2246_v13 = vrot.slane %v1843_v24, 2 }
 0x3a8   : > { %v1846_v39 = vor.u32 %v1845_v32, %v1841_v36  ;;  %v3388_v32 = vld [vmem:[%s4173_s8 + $0x240] ss:$16 sps:$4 sm:$0xff]   ;;  %v3397_v36 = vld [vmem:[%s4173_s8 + $0x268] ss:$16 sps:$4 sm:$0xff]  }
 0x3a9   : > { %1937 = vmatpush1.bf16.msra.mxu0 %v3310_v21  ;;  %1980 = vmatpush1.bf16.msra.mxu1 %v3313_v8  ;;  %v2247_v18 = vor.u32 %v2246_v13, %v2245_v12  ;;  %v2252_v19 = vor.u32 %v2251_v11, %v2250_v10  ;;  %v3376_v21 = vld [vmem:[%s4173_s8 + $0x200] ss:$16 sps:$4 sm:$0xff]   ;;  %v3379_v8 = vld [vmem:[%s4173_s8 + $0x208] ss:$16 sps:$4 sm:$0xff]  }
 0x3aa   : > { %1938 = vmatprep.subr.bf16.mxu0 %v3318_v22  ;;  %1981 = vmatprep.subr.bf16.mxu1 %v3321_v23  ;;  %v1850_v45 = vsel %vm451_vm5, %v1846_v39, %v1849_v40  ;;  %v3384_v22 = vld [vmem:[%s4173_s8 + $0x224] ss:$16 sps:$4 sm:$0xff]   ;;  %v3387_v23 = vld [vmem:[%s4173_s8 + $0x22c] ss:$16 sps:$4 sm:$0xff]   ;;  %v2631_v40 = vlaneseq }
 0x3ab   : > { %v2253_v24 = vsel %vm2244_vm9, %v2247_v18, %v2252_v19 }
 0x3ad   : > { %1939 = vmatpush1.bf16.msra.mxu0 %v3316_v25  ;;  %1982 = vmatpush1.bf16.msra.mxu1 %v3319_v26  ;;  %v3382_v25 = vld [vmem:[%s4173_s8 + $0x220] ss:$16 sps:$4 sm:$0xff]   ;;  %v3385_v26 = vld [vmem:[%s4173_s8 + $0x228] ss:$16 sps:$4 sm:$0xff]  }
 0x3ae   : > { %1940 = vmatprep.subr.bf16.mxu0 %v3324_v28  ;;  %1983 = vmatprep.subr.bf16.mxu1 %v3327_v29  ;;  %v3390_v28 = vld [vmem:[%s4173_s8 + $0x244] ss:$16 sps:$4 sm:$0xff]   ;;  %v3393_v29 = vld [vmem:[%s4173_s8 + $0x24c] ss:$16 sps:$4 sm:$0xff]  }
 0x3b1   : > { %1941 = vmatpush1.bf16.msra.mxu0 %v3322_v34  ;;  %1984 = vmatpush1.bf16.msra.mxu1 %v3325_v35  ;;  %v3396_v34 = vld [vmem:[%s4173_s8 + $0x264] ss:$16 sps:$4 sm:$0xff]   ;;  %v3394_v35 = vld [vmem:[%s4173_s8 + $0x260] ss:$16 sps:$4 sm:$0xff]  }
 0x3b2   : > { %2133 = vmatprep.subr.bf16.mxu0 %v3330_v37  ;;  %2176 = vmatprep.subr.bf16.mxu1 %v3333_v38  ;;  %v2450_v37 = vrot.slane %v3962_v27, 2  ;;  %v2449_v38 = vrot.slane %v3934_v20, 2 }
 0x3b4   : > { %2924 = vmatmul.mubr.msk.bf16.vlgmr.msra.gmra.mrb[0].mxu0 %vm591_vm6, %v1850_v45  ;;  %2925 = vmatmul.mubr.msk.bf16.vlgmr.msra.gmra.mrb[0].mxu1 %vm591_vm6, %v1850_v45  ;;  %v2451_v39 = vsel %vm2448_vm10, %v2449_v38, %v2450_v37 }
 0x3b5   : > { %2134 = vmatpush1.bf16.msra.mxu0 %v3328_v41  ;;  %2177 = vmatpush1.bf16.msra.mxu1 %v3331_v42  ;;  %v2632_v41 = vshrl.u32 %v2631_v40, 7 }
 0x3b6   : > { %2135 = vmatprep.subr.bf16.mxu0 %v3336_v43  ;;  %2178 = vmatprep.subr.bf16.mxu1 %v3339_v44  ;;  %v2629_v44 = vld [vmem:[%s4174_s9] sm:$0xf] }
 0x3b7   : > { %2165 = vmatprep.mubr.bf16.mxu0 %v3410_v31  ;;  %2208 = vmatprep.mubr.bf16.mxu1 %v3410_v31  ;;  %v2633_v42 = vsub.s32 0, %v2632_v41  ;;  %v2641_v43 = vsub.s32 2, %v2632_v41  ;;  %v2637_v27 = vsub.s32 1, %v2632_v41  ;;  %v2645_v45 = vsub.s32 3, %v2632_v41 }
 0x3b9   : > { %2136 = vmatpush1.bf16.msra.mxu0 %v3334_v46  ;;  %2179 = vmatpush1.bf16.msra.mxu1 %v3337_v47  ;;  %v2634_v20 = vrot.slane %v2629_v44, %v2633_v42  ;;  %v2642_v46 = vrot.slane %v2629_v44, %v2641_v43  ;;  %v2638_v47 = vrot.slane %v2629_v44, %v2637_v27 }
 0x3ba   : > { %2137 = vmatprep.subr.bf16.mxu0 %v3342_v48  ;;  %2180 = vmatprep.subr.bf16.mxu1 %v3345_v49  ;;  %v2646_v48 = vrot.slane %v2629_v44, %v2645_v45 }
 0x3bd   : > { %2138 = vmatpush1.bf16.msra.mxu0 %v3340_v50  ;;  %2181 = vmatpush1.bf16.msra.mxu1 %v3343_v51 }
 0x3be   : > { %2139 = vmatprep.subr.bf16.mxu0 %v3348_v52  ;;  %2182 = vmatprep.subr.bf16.mxu1 %v3351_v53 }
 0x3c1   : > { %2140 = vmatpush1.bf16.msra.mxu0 %v3346_v54  ;;  %2183 = vmatpush1.bf16.msra.mxu1 %v3349_v55 }
 0x3c2   : > { %2337 = vmatprep.subr.bf16.mxu0 %v3354_v56  ;;  %2380 = vmatprep.subr.bf16.mxu1 %v3357_v57 }
 0x3c4   : > { %2958 = vmatmul.mubr.msk.bf16.vlgmr.msra.gmra.mrb[0].mxu0 %vm591_vm6, %v2049_v62  ;;  %2959 = vmatmul.mubr.msk.bf16.vlgmr.msra.gmra.mrb[0].mxu1 %vm591_vm6, %v2049_v62 }
 0x3c5   : > { %2338 = vmatpush1.bf16.msra.mxu0 %v3352_v59  ;;  %2381 = vmatpush1.bf16.msra.mxu1 %v3355_v0 }
 0x3c6   : > { %2339 = vmatprep.subr.bf16.mxu0 %v3360_v60  ;;  %2382 = vmatprep.subr.bf16.mxu1 %v3363_v61 }
 0x3c7   : > { %2369 = vmatprep.mubr.bf16.mxu0 %v3410_v31  ;;  %2412 = vmatprep.mubr.bf16.mxu1 %v3410_v31 }
 0x3c9   : > { %2340 = vmatpush1.bf16.msra.mxu0 %v3358_v63  ;;  %2383 = vmatpush1.bf16.msra.mxu1 %v3361_v1 }
 0x3ca   : > { %2341 = vmatprep.subr.bf16.mxu0 %v3366_v2  ;;  %2384 = vmatprep.subr.bf16.mxu1 %v3369_v3 }
 0x3cd   : > { %2342 = vmatpush1.bf16.msra.mxu0 %v3364_v5  ;;  %2385 = vmatpush1.bf16.msra.mxu1 %v3367_v6 }
 0x3ce   : > { %2343 = vmatprep.subr.bf16.mxu0 %v3372_v7  ;;  %2386 = vmatprep.subr.bf16.mxu1 %v3375_v9 }
 0x3d1   : > { %2344 = vmatpush1.bf16.msra.mxu0 %v3370_v14  ;;  %2387 = vmatpush1.bf16.msra.mxu1 %v3373_v15 }
 0x3d2   : > { %2535 = vmatprep.subr.bf16.mxu0 %v3378_v16  ;;  %2578 = vmatprep.subr.bf16.mxu1 %v3381_v17 }
 0x3d4   : > { %2992 = vmatmul.mubr.msk.bf16.vlgmr.msra.gmra.mrb[0].mxu0 %vm591_vm6, %v2253_v24  ;;  %2993 = vmatmul.mubr.msk.bf16.vlgmr.msra.gmra.mrb[0].mxu1 %vm591_vm6, %v2253_v24 }
 0x3d5   : > { %2536 = vmatpush1.bf16.msra.mxu0 %v3376_v21  ;;  %2579 = vmatpush1.bf16.msra.mxu1 %v3379_v8 }
 0x3d6   : > { %2537 = vmatprep.subr.bf16.mxu0 %v3384_v22  ;;  %2580 = vmatprep.subr.bf16.mxu1 %v3387_v23 }
 0x3d7   : > { %2567 = vmatprep.mubr.bf16.mxu0 %v3410_v31  ;;  %2610 = vmatprep.mubr.bf16.mxu1 %v3410_v31  ;;  %v3399_v31 = vld [vmem:[%s4173_s8 + $0x26c] ss:$16 sps:$4 sm:$0xff]  }
 0x3d9   : > { %2538 = vmatpush1.bf16.msra.mxu0 %v3382_v25  ;;  %2581 = vmatpush1.bf16.msra.mxu1 %v3385_v26 }
 0x3da   : > { %2539 = vmatprep.subr.bf16.mxu0 %v3390_v28  ;;  %2582 = vmatprep.subr.bf16.mxu1 %v3393_v29 }
 0x3dd   : > { %2540 = vmatpush1.bf16.msra.mxu0 %v3388_v32  ;;  %2583 = vmatpush1.bf16.msra.mxu1 %v3391_v33 }
 0x3de   : > { %2541 = vmatprep.subr.bf16.mxu0 %v3396_v34  ;;  %2584 = vmatprep.subr.bf16.mxu1 %v3399_v31 }
 0x3e1   : > { %2542 = vmatpush1.bf16.msra.mxu0 %v3394_v35  ;;  %2585 = vmatpush1.bf16.msra.mxu1 %v3397_v36 }
 0x3e4   : > { %3026 = vmatmul.mubr.msk.bf16.vlgmr.msra.gmra.mrb[0].mxu0 %vm591_vm6, %v2451_v39  ;;  %3027 = vmatmul.mubr.msk.bf16.vlgmr.msra.gmra.mrb[0].mxu1 %vm591_vm6, %v2451_v39 }
 0x4b7   : > { %v2569_v49 = vpop.f32.mrb[0].mxu0  ;;  %v2612_v50 = vpop.f32.mrb[0].mxu1 }
 0x4b8   : > { %v2651_v51 = vadd.f32 %v2634_v20, %v2569_v49  ;;  %v2653_v52 = vadd.f32 %v2642_v46, %v2612_v50  ;;  %v2571_v53 = vpop.f32.mrb[1].mxu0  ;;  %v2614_v54 = vpop.f32.mrb[1].mxu1 }
 0x4b9   : > { %v2652_v55 = vadd.f32 %v2638_v47, %v2571_v53  ;;  %v2654_v56 = vadd.f32 %v2646_v48, %v2614_v54  ;;  %v2573_v57 = vpop.f32.mrb[2].mxu0  ;;  %v2616_v30 = vpop.f32.mrb[2].mxu1 }
 0x4ba   : > { %v2659_v58 = vmax.f32 %v2651_v51, 0.0  ;;  %v2661_v59 = vmax.f32 %v2653_v52, 0.0  ;;  %v2655_v0 = vadd.f32 %v2634_v20, %v2573_v57  ;;  %v2657_v60 = vadd.f32 %v2642_v46, %v2616_v30  ;;  %v2575_v61 = vpop.f32.mrb[3].mxu0  ;;  %v2618_v62 = vpop.f32.mrb[3].mxu1 }
 0x4bb   : > { %v2660_v63 = vmax.f32 %v2652_v55, 0.0  ;;  %v2662_v1 = vmax.f32 %v2654_v56, 0.0  ;;  %v2656_v2 = vadd.f32 %v2638_v47, %v2575_v61  ;;  %v2658_v3 = vadd.f32 %v2646_v48, %v2618_v62 }
 0x4bc   : > { %2667 = vst [vmem:[%s359_s26] sm:$0xff] %v2659_v58  ;;  %2669 = vst [vmem:[%s359_s26 + $0x10] sm:$0xff] %v2661_v59  ;;  %v2663_v4 = vmax.f32 %v2655_v0, 0.0  ;;  %v2665_v5 = vmax.f32 %v2657_v60, 0.0 }
 0x4bd   : > { %2668 = vst [vmem:[%s359_s26 + $0x8] sm:$0xff] %v2660_v63  ;;  %2670 = vst [vmem:[%s359_s26 + $0x18] sm:$0xff] %v2662_v1  ;;  %v2664_v6 = vmax.f32 %v2656_v2, 0.0  ;;  %v2666_v7 = vmax.f32 %v2658_v3, 0.0 }
 0x4be   : > { %2671 = vst [vmem:[%s359_s26 + $0x20] sm:$0xff] %v2663_v4  ;;  %2673 = vst [vmem:[%s359_s26 + $0x30] sm:$0xff] %v2665_v5 }
 0x4bf   : > { %2672 = vst [vmem:[%s359_s26 + $0x28] sm:$0xff] %v2664_v6  ;;  %2674 = vst [vmem:[%s359_s26 + $0x38] sm:$0xff] %v2666_v7 }
 0x4c0 PF: > { %s20_s13 = sadd.s32 1, %s3406_s13  }
 0x4c1   : > { %p17_p4 = scmp.ge.s32.totalorder %s20_s13, 4  }
 0x4c3   :  { %19 = sbr.rel (!%p17_p4) target bundleno = 1 (0x1), region = 96 }

</bundles_post_ra>
